<compile_context>
chip_gen: v7x
topology: tpu7x:2x2x1
jax: 0.10.0
libtpu: 0.0.40
codegen_flags: <defaults>
</compile_context>

<pallas_src>
import functools
import math

import jax
import jax.numpy as jnp
from jax.experimental import pallas as pl
from jax.experimental.pallas import tpu as pltpu


def _attention_kernel(q_ref, k_ref, v_ref,
                      wqt_ref, bq_ref, wkt_ref, bk_ref, wvt_ref, bv_ref,
                      w1t_ref, b1_ref, w2t_ref, b2_ref, vw_ref, vb_ref,
                      wot_ref, bo_ref,
                      o_ref, attn_ref,
                      *, n_heads, head_dim, matmul_dtype):
    Lq = q_ref.shape[1]
    Lk = k_ref.shape[1]
    D = head_dim

    def mm(a, b):
        return jnp.dot(a.astype(matmul_dtype), b.astype(matmul_dtype),
                       preferred_element_type=jnp.float32)

    q = q_ref[0]                                  # [Lq, hid]
    k = k_ref[0]                                  # [Lk, hid]
    v = v_ref[0]                                  # [Lk, hid]

    # Full-width projections: one [L, hid] x [hid, hid] MXU matmul each (all heads at once).
    Q = mm(q, wqt_ref[...]) + bq_ref[...]         # [Lq, hid]
    K = mm(k, wkt_ref[...]) + bk_ref[...]         # [Lk, hid]
    V = mm(v, wvt_ref[...]) + bv_ref[...]         # [Lk, hid]

    vb = vb_ref[0]                                # scalar (SMEM)

    head_outs = []
    for h in range(n_heads):                      # statically unrolled
        lo = h * D
        Qh = Q[:, lo:lo + D]                      # [Lq, D]
        Kh = K[:, lo:lo + D]                      # [Lk, D]
        Vh = V[:, lo:lo + D]                      # [Lk, D]

        tQ = mm(Qh, w1t_ref[...]) + b1_ref[...]   # [Lq, D]
        tK = mm(Kh, w2t_ref[...]) + b2_ref[...]   # [Lk, D]
        tKT = tK.T                                # [D, Lk]  (small 8x8-granule transpose)

        # Fused D-reduction: never materialize the [Lq, Lk, D] tensor.
        energy = jnp.full((Lq, Lk), vb, dtype=jnp.float32)
        for d in range(D):                        # statically unrolled, VPU mul-adds
            energy = energy + vw_ref[d] * jnp.tanh(tQ[:, d:d + 1] + tKT[d:d + 1, :])

        # Softmax over keys; reciprocal on EUP + one Newton step (full f32 precision).
        m = jnp.max(energy, axis=-1, keepdims=True)
        p = jnp.exp(energy - m)
        l = jnp.sum(p, axis=-1, keepdims=True)
        inv = pl.reciprocal(l, approx=True)
        inv = inv * (2.0 - l * inv)
        attn = p * inv                            # [Lq, Lk]
        attn_ref[0, h] = attn

        head_outs.append(mm(attn, Vh))            # [Lq, D]

    # Concatenate heads and apply fc_o as a single [Lq, hid] x [hid, hid] matmul.
    x = jnp.concatenate(head_outs, axis=-1)       # [Lq, hid]
    o_ref[0] = mm(x, wot_ref[...]) + bo_ref[...]


def prepare_params(params):
    """Hoisted, call-once weight re-layout (torch Linear -> kernel-ready layout)."""
    (Wq, bq, Wk, bk, Wv, bv, Wo, bo, W1, b1, W2, b2, vw, vb) = params
    hid = Wq.shape[0]
    D = W1.shape[0]
    return (Wq.T, bq.reshape(1, hid),
            Wk.T, bk.reshape(1, hid),
            Wv.T, bv.reshape(1, hid),
            Wo.T, bo.reshape(1, hid),
            W1.T, b1.reshape(1, D),
            W2.T, b2.reshape(1, D),
            vw.reshape(D), vb.reshape(1))


def attention_layer(query, key, value, prepared, *, n_heads,
                    matmul_dtype=jnp.float32):
    """Pallas implementation of AttentionLayer.forward (eval mode, mask=None)."""
    B, Lq, hid = query.shape
    Lk = key.shape[1]
    D = hid // n_heads
    H = n_heads

    (WqT, bq, WkT, bk, WvT, bv, WoT, bo, W1T, b1, W2T, b2, vw, vb) = prepared

    kernel = functools.partial(_attention_kernel, n_heads=H, head_dim=D,
                               matmul_dtype=matmul_dtype)

    in_specs = [
        pl.BlockSpec((1, Lq, hid), lambda b: (b, 0, 0)),              # query
        pl.BlockSpec((1, Lk, hid), lambda b: (b, 0, 0)),              # key
        pl.BlockSpec((1, Lk, hid), lambda b: (b, 0, 0)),              # value
        pl.BlockSpec((hid, hid), lambda b: (0, 0)),                   # Wq^T
        pl.BlockSpec((1, hid), lambda b: (0, 0)),                     # bq
        pl.BlockSpec((hid, hid), lambda b: (0, 0)),                   # Wk^T
        pl.BlockSpec((1, hid), lambda b: (0, 0)),                     # bk
        pl.BlockSpec((hid, hid), lambda b: (0, 0)),                   # Wv^T
        pl.BlockSpec((1, hid), lambda b: (0, 0)),                     # bv
        pl.BlockSpec((D, D), lambda b: (0, 0)),                       # W1^T
        pl.BlockSpec((1, D), lambda b: (0, 0)),                       # b1
        pl.BlockSpec((D, D), lambda b: (0, 0)),                       # W2^T
        pl.BlockSpec((1, D), lambda b: (0, 0)),                       # b2
        pl.BlockSpec(memory_space=pltpu.MemorySpace.SMEM),            # vw (D,) scalars
        pl.BlockSpec(memory_space=pltpu.MemorySpace.SMEM),            # vb (1,) scalar
        pl.BlockSpec((hid, hid), lambda b: (0, 0)),                   # Wo^T
        pl.BlockSpec((1, hid), lambda b: (0, 0)),                     # bo
    ]
    out_specs = [
        pl.BlockSpec((1, Lq, hid), lambda b: (b, 0, 0)),              # x
        pl.BlockSpec((1, H, Lq, Lk), lambda b: (b, 0, 0, 0)),         # attention
    ]
    out_shape = (
        jax.ShapeDtypeStruct((B, Lq, hid), jnp.float32),
        jax.ShapeDtypeStruct((B, H, Lq, Lk), jnp.float32),
    )

    return pl.pallas_call(
        kernel,
        out_shape=out_shape,
        grid_spec=pltpu.PrefetchScalarGridSpec(
            num_scalar_prefetch=0,
            grid=(B,),
            in_specs=in_specs,
            out_specs=out_specs,
        ),
        compiler_params=pltpu.CompilerParams(
            dimension_semantics=("parallel",),
            vmem_limit_bytes=32 * 1024 * 1024),
    )(query, key, value,
      WqT, bq, WkT, bk, WvT, bv,
      W1T, b1, W2T, b2, vw, vb,
      WoT, bo)


def reference_attention(query, key, value, params, *, n_heads):
    """Pure-JAX reference mirroring the PyTorch forward (eval mode, mask=None)."""
    (Wq, bq, Wk, bk, Wv, bv, Wo, bo, W1, b1, W2, b2, vw, vb) = params
    B, Lq, hid = query.shape
    Lk = key.shape[1]
    H = n_heads
    D = hid // H

    Q = query @ Wq.T + bq
    K = key @ Wk.T + bk
    V = value @ Wv.T + bv
    Q = Q.reshape(B, Lq, H, D).transpose(0, 2, 1, 3)
    K = K.reshape(B, Lk, H, D).transpose(0, 2, 1, 3)
    V = V.reshape(B, Lk, H, D).transpose(0, 2, 1, 3)

    tQ = Q @ W1.T + b1                      # [B,H,Lq,D]
    tK = K @ W2.T + b2                      # [B,H,Lk,D]
    energy = jnp.tanh(tQ[:, :, :, None, :] + tK[:, :, None, :, :])   # [B,H,Lq,Lk,D]
    e = jnp.einsum('bhqkd,d->bhqk', energy, vw[0]) + vb[0]
    attn = jax.nn.softmax(e, axis=-1)
    x = jnp.einsum('bhqk,bhkd->bhqd', attn, V)
    x = x.transpose(0, 2, 1, 3).reshape(B, Lq, hid)
    out = x @ Wo.T + bo
    return out, attn


def _linear_params(key, out_f, in_f):
    """Deterministic torch.nn.Linear-style init: U(-1/sqrt(in_f), 1/sqrt(in_f))."""
    kw, kb = jax.random.split(key)
    bound = 1.0 / math.sqrt(in_f)
    w = jax.random.uniform(kw, (out_f, in_f), jnp.float32, -bound, bound)
    b = jax.random.uniform(kb, (out_f,), jnp.float32, -bound, bound)
    return w, b


if __name__ == "__main__":
    B, L, hid, n_heads = 2, 8, 32, 4
    D = hid // n_heads

    root = jax.random.PRNGKey(0)
    keys = jax.random.split(root, 16)

    Wq, bq = _linear_params(keys[0], hid, hid)
    Wk, bk = _linear_params(keys[1], hid, hid)
    Wv, bv = _linear_params(keys[2], hid, hid)
    Wo, bo = _linear_params(keys[3], hid, hid)
    W1, b1 = _linear_params(keys[4], D, D)
    W2, b2 = _linear_params(keys[5], D, D)
    vw, vb = _linear_params(keys[6], 1, D)        # v: Linear(head_dim, 1)
    params = (Wq, bq, Wk, bk, Wv, bv, Wo, bo, W1, b1, W2, b2, vw, vb)

    query = jax.random.normal(keys[7], (B, L, hid), jnp.float32)
    key_ = jax.random.normal(keys[8], (B, L, hid), jnp.float32)
    value = jax.random.normal(keys[9], (B, L, hid), jnp.float32)

    prepared = prepare_params(params)             # hoisted weight re-layout (once)

    run = jax.jit(functools.partial(attention_layer, n_heads=n_heads))
    out, attn = run(query, key_, value, prepared)
    jax.block_until_ready((out, attn))

    out_ref, attn_ref = reference_attention(query, key_, value, params, n_heads=n_heads)

    assert out.shape == (B, L, hid) and attn.shape == (B, n_heads, L, L)
    # 1e-4 tolerance: EUP-seeded reciprocal + Newton step and fused-reduction ordering
    # leave ~1e-6..1e-5-level differences vs the big-tensor einsum reference.
    assert jnp.allclose(out, out_ref, rtol=1e-4, atol=1e-4), "output mismatch"
    assert jnp.allclose(attn, attn_ref, rtol=1e-4, atol=1e-4), "attention mismatch"

    print("KERNEL_OK")
</pallas_src>

<mosaic_0001>
module attributes {stable_mosaic.version = 11 : i64} {
  func.func @_attention_kernel(%arg0: i32, %arg1: memref<1x8x32xf32, #tpu.memory_space<vmem>>, %arg2: memref<1x8x32xf32, #tpu.memory_space<vmem>>, %arg3: memref<1x8x32xf32, #tpu.memory_space<vmem>>, %arg4: memref<32x32xf32, #tpu.memory_space<vmem>>, %arg5: memref<1x32xf32, #tpu.memory_space<vmem>>, %arg6: memref<32x32xf32, #tpu.memory_space<vmem>>, %arg7: memref<1x32xf32, #tpu.memory_space<vmem>>, %arg8: memref<32x32xf32, #tpu.memory_space<vmem>>, %arg9: memref<1x32xf32, #tpu.memory_space<vmem>>, %arg10: memref<8x8xf32, #tpu.memory_space<vmem>>, %arg11: memref<1x8xf32, #tpu.memory_space<vmem>>, %arg12: memref<8x8xf32, #tpu.memory_space<vmem>>, %arg13: memref<1x8xf32, #tpu.memory_space<vmem>>, %arg14: memref<8xf32, #tpu.memory_space<smem>>, %arg15: memref<1xf32, #tpu.memory_space<smem>>, %arg16: memref<32x32xf32, #tpu.memory_space<vmem>>, %arg17: memref<1x32xf32, #tpu.memory_space<vmem>>, %arg18: memref<1x8x32xf32, #tpu.memory_space<vmem>>, %arg19: memref<1x4x8x8xf32, #tpu.memory_space<vmem>>) attributes {dimension_semantics = [#tpu.dimension_semantics<parallel>], iteration_bounds = array<i64: 2>, scalar_prefetch = 0 : i64, scratch_operands = 0 : i64, tpu.core_type = #tpu.core_type<tc>, window_params = [{transform_indices = @transform_0, window_bounds = array<i64: 1, 8, 32>}, {transform_indices = @transform_1, window_bounds = array<i64: 1, 8, 32>}, {transform_indices = @transform_2, window_bounds = array<i64: 1, 8, 32>}, {pipeline_mode = #tpu.pipeline_mode<synchronous>, transform_indices = @transform_3, window_bounds = array<i64: 32, 32>}, {pipeline_mode = #tpu.pipeline_mode<synchronous>, transform_indices = @transform_4, window_bounds = array<i64: 1, 32>}, {pipeline_mode = #tpu.pipeline_mode<synchronous>, transform_indices = @transform_5, window_bounds = array<i64: 32, 32>}, {pipeline_mode = #tpu.pipeline_mode<synchronous>, transform_indices = @transform_6, window_bounds = array<i64: 1, 32>}, {pipeline_mode = #tpu.pipeline_mode<synchronous>, transform_indices = @transform_7, window_bounds = array<i64: 32, 32>}, {pipeline_mode = #tpu.pipeline_mode<synchronous>, transform_indices = @transform_8, window_bounds = array<i64: 1, 32>}, {pipeline_mode = #tpu.pipeline_mode<synchronous>, transform_indices = @transform_9, window_bounds = array<i64: 8, 8>}, {pipeline_mode = #tpu.pipeline_mode<synchronous>, transform_indices = @transform_10, window_bounds = array<i64: 1, 8>}, {pipeline_mode = #tpu.pipeline_mode<synchronous>, transform_indices = @transform_11, window_bounds = array<i64: 8, 8>}, {pipeline_mode = #tpu.pipeline_mode<synchronous>, transform_indices = @transform_12, window_bounds = array<i64: 1, 8>}, {transform_indices = @transform_13, window_bounds = array<i64: 8>}, {transform_indices = @transform_14, window_bounds = array<i64: 1>}, {pipeline_mode = #tpu.pipeline_mode<synchronous>, transform_indices = @transform_15, window_bounds = array<i64: 32, 32>}, {pipeline_mode = #tpu.pipeline_mode<synchronous>, transform_indices = @transform_16, window_bounds = array<i64: 1, 32>}, {transform_indices = @transform_17, window_bounds = array<i64: 1, 8, 32>}, {transform_indices = @transform_18, window_bounds = array<i64: 1, 4, 8, 8>}]} {
    %c0 = arith.constant 0 : index
    %c0_0 = arith.constant 0 : index
    %c0_1 = arith.constant 0 : index
    %0 = vector.load %arg1[%c0, %c0_0, %c0_1] : memref<1x8x32xf32, #tpu.memory_space<vmem>>, vector<1x8x32xf32>
    %1 = vector.shape_cast %0 : vector<1x8x32xf32> to vector<8x32xf32>
    %c0_2 = arith.constant 0 : index
    %c0_3 = arith.constant 0 : index
    %c0_4 = arith.constant 0 : index
    %2 = vector.load %arg2[%c0_2, %c0_3, %c0_4] : memref<1x8x32xf32, #tpu.memory_space<vmem>>, vector<1x8x32xf32>
    %3 = vector.shape_cast %2 : vector<1x8x32xf32> to vector<8x32xf32>
    %c0_5 = arith.constant 0 : index
    %c0_6 = arith.constant 0 : index
    %c0_7 = arith.constant 0 : index
    %4 = vector.load %arg3[%c0_5, %c0_6, %c0_7] : memref<1x8x32xf32, #tpu.memory_space<vmem>>, vector<1x8x32xf32>
    %5 = vector.shape_cast %4 : vector<1x8x32xf32> to vector<8x32xf32>
    %c0_8 = arith.constant 0 : index
    %c0_9 = arith.constant 0 : index
    %6 = vector.load %arg4[%c0_8, %c0_9] : memref<32x32xf32, #tpu.memory_space<vmem>>, vector<32x32xf32>
    %cst = arith.constant dense<0.000000e+00> : vector<8x32xf32>
    %7 = tpu.matmul %1, %6, %cst {dimension_numbers = #tpu.dot_dimension_numbers<[1], [0], [0], [1], [0, 0, 1, 1], [], []>} : vector<8x32xf32>, vector<32x32xf32>, vector<8x32xf32> -> vector<8x32xf32>
    %c0_10 = arith.constant 0 : index
    %c0_11 = arith.constant 0 : index
    %8 = vector.load %arg5[%c0_10, %c0_11] : memref<1x32xf32, #tpu.memory_space<vmem>>, vector<1x32xf32>
    %9 = vector.broadcast %8 : vector<1x32xf32> to vector<8x32xf32>
    %10 = arith.addf %7, %9 : vector<8x32xf32>
    %c0_12 = arith.constant 0 : index
    %c0_13 = arith.constant 0 : index
    %11 = vector.load %arg6[%c0_12, %c0_13] : memref<32x32xf32, #tpu.memory_space<vmem>>, vector<32x32xf32>
    %cst_14 = arith.constant dense<0.000000e+00> : vector<8x32xf32>
    %12 = tpu.matmul %3, %11, %cst_14 {dimension_numbers = #tpu.dot_dimension_numbers<[1], [0], [0], [1], [0, 0, 1, 1], [], []>} : vector<8x32xf32>, vector<32x32xf32>, vector<8x32xf32> -> vector<8x32xf32>
    %c0_15 = arith.constant 0 : index
    %c0_16 = arith.constant 0 : index
    %13 = vector.load %arg7[%c0_15, %c0_16] : memref<1x32xf32, #tpu.memory_space<vmem>>, vector<1x32xf32>
    %14 = vector.broadcast %13 : vector<1x32xf32> to vector<8x32xf32>
    %15 = arith.addf %12, %14 : vector<8x32xf32>
    %c0_17 = arith.constant 0 : index
    %c0_18 = arith.constant 0 : index
    %16 = vector.load %arg8[%c0_17, %c0_18] : memref<32x32xf32, #tpu.memory_space<vmem>>, vector<32x32xf32>
    %cst_19 = arith.constant dense<0.000000e+00> : vector<8x32xf32>
    %17 = tpu.matmul %5, %16, %cst_19 {dimension_numbers = #tpu.dot_dimension_numbers<[1], [0], [0], [1], [0, 0, 1, 1], [], []>} : vector<8x32xf32>, vector<32x32xf32>, vector<8x32xf32> -> vector<8x32xf32>
    %c0_20 = arith.constant 0 : index
    %c0_21 = arith.constant 0 : index
    %18 = vector.load %arg9[%c0_20, %c0_21] : memref<1x32xf32, #tpu.memory_space<vmem>>, vector<1x32xf32>
    %19 = vector.broadcast %18 : vector<1x32xf32> to vector<8x32xf32>
    %20 = arith.addf %17, %19 : vector<8x32xf32>
    %c0_22 = arith.constant 0 : index
    %21 = memref.load %arg15[%c0_22] : memref<1xf32, #tpu.memory_space<smem>>
    %22 = vector.extract_strided_slice %10 {offsets = [0, 0], sizes = [8, 8], strides = [1, 1]} : vector<8x32xf32> to vector<8x8xf32>
    %23 = vector.extract_strided_slice %15 {offsets = [0, 0], sizes = [8, 8], strides = [1, 1]} : vector<8x32xf32> to vector<8x8xf32>
    %24 = vector.extract_strided_slice %20 {offsets = [0, 0], sizes = [8, 8], strides = [1, 1]} : vector<8x32xf32> to vector<8x8xf32>
    %c0_23 = arith.constant 0 : index
    %c0_24 = arith.constant 0 : index
    %25 = vector.load %arg10[%c0_23, %c0_24] : memref<8x8xf32, #tpu.memory_space<vmem>>, vector<8x8xf32>
    %cst_25 = arith.constant dense<0.000000e+00> : vector<8x8xf32>
    %26 = tpu.matmul %22, %25, %cst_25 {dimension_numbers = #tpu.dot_dimension_numbers<[1], [0], [0], [1], [0, 0, 1, 1], [], []>} : vector<8x8xf32>, vector<8x8xf32>, vector<8x8xf32> -> vector<8x8xf32>
    %c0_26 = arith.constant 0 : index
    %c0_27 = arith.constant 0 : index
    %27 = vector.load %arg11[%c0_26, %c0_27] : memref<1x8xf32, #tpu.memory_space<vmem>>, vector<1x8xf32>
    %28 = vector.broadcast %27 : vector<1x8xf32> to vector<8x8xf32>
    %29 = arith.addf %26, %28 : vector<8x8xf32>
    %c0_28 = arith.constant 0 : index
    %c0_29 = arith.constant 0 : index
    %30 = vector.load %arg12[%c0_28, %c0_29] : memref<8x8xf32, #tpu.memory_space<vmem>>, vector<8x8xf32>
    %cst_30 = arith.constant dense<0.000000e+00> : vector<8x8xf32>
    %31 = tpu.matmul %23, %30, %cst_30 {dimension_numbers = #tpu.dot_dimension_numbers<[1], [0], [0], [1], [0, 0, 1, 1], [], []>} : vector<8x8xf32>, vector<8x8xf32>, vector<8x8xf32> -> vector<8x8xf32>
    %c0_31 = arith.constant 0 : index
    %c0_32 = arith.constant 0 : index
    %32 = vector.load %arg13[%c0_31, %c0_32] : memref<1x8xf32, #tpu.memory_space<vmem>>, vector<1x8xf32>
    %33 = vector.broadcast %32 : vector<1x8xf32> to vector<8x8xf32>
    %34 = arith.addf %31, %33 : vector<8x8xf32>
    %35 = tpu.transpose %34, [1, 0] : vector<8x8xf32> -> vector<8x8xf32>
    %36 = vector.broadcast %21 : f32 to vector<8x8xf32>
    %c0_33 = arith.constant 0 : index
    %37 = memref.load %arg14[%c0_33] : memref<8xf32, #tpu.memory_space<smem>>
    %38 = vector.extract_strided_slice %29 {offsets = [0, 0], sizes = [8, 1], strides = [1, 1]} : vector<8x8xf32> to vector<8x1xf32>
    %39 = vector.extract_strided_slice %35 {offsets = [0, 0], sizes = [1, 8], strides = [1, 1]} : vector<8x8xf32> to vector<1x8xf32>
    %40 = vector.broadcast %38 : vector<8x1xf32> to vector<8x8xf32>
    %41 = vector.broadcast %39 : vector<1x8xf32> to vector<8x8xf32>
    %42 = arith.addf %40, %41 : vector<8x8xf32>
    %43 = math.tanh %42 : vector<8x8xf32>
    %44 = vector.broadcast %37 : f32 to vector<8x8xf32>
    %45 = arith.mulf %44, %43 : vector<8x8xf32>
    %46 = arith.addf %36, %45 : vector<8x8xf32>
    %c1 = arith.constant 1 : index
    %47 = memref.load %arg14[%c1] : memref<8xf32, #tpu.memory_space<smem>>
    %48 = vector.extract_strided_slice %29 {offsets = [0, 1], sizes = [8, 1], strides = [1, 1]} : vector<8x8xf32> to vector<8x1xf32>
    %49 = vector.extract_strided_slice %35 {offsets = [1, 0], sizes = [1, 8], strides = [1, 1]} : vector<8x8xf32> to vector<1x8xf32>
    %50 = vector.broadcast %48 : vector<8x1xf32> to vector<8x8xf32>
    %51 = vector.broadcast %49 : vector<1x8xf32> to vector<8x8xf32>
    %52 = arith.addf %50, %51 : vector<8x8xf32>
    %53 = math.tanh %52 : vector<8x8xf32>
    %54 = vector.broadcast %47 : f32 to vector<8x8xf32>
    %55 = arith.mulf %54, %53 : vector<8x8xf32>
    %56 = arith.addf %46, %55 : vector<8x8xf32>
    %c2 = arith.constant 2 : index
    %57 = memref.load %arg14[%c2] : memref<8xf32, #tpu.memory_space<smem>>
    %58 = vector.extract_strided_slice %29 {offsets = [0, 2], sizes = [8, 1], strides = [1, 1]} : vector<8x8xf32> to vector<8x1xf32>
    %59 = vector.extract_strided_slice %35 {offsets = [2, 0], sizes = [1, 8], strides = [1, 1]} : vector<8x8xf32> to vector<1x8xf32>
    %60 = vector.broadcast %58 : vector<8x1xf32> to vector<8x8xf32>
    %61 = vector.broadcast %59 : vector<1x8xf32> to vector<8x8xf32>
    %62 = arith.addf %60, %61 : vector<8x8xf32>
    %63 = math.tanh %62 : vector<8x8xf32>
    %64 = vector.broadcast %57 : f32 to vector<8x8xf32>
    %65 = arith.mulf %64, %63 : vector<8x8xf32>
    %66 = arith.addf %56, %65 : vector<8x8xf32>
    %c3 = arith.constant 3 : index
    %67 = memref.load %arg14[%c3] : memref<8xf32, #tpu.memory_space<smem>>
    %68 = vector.extract_strided_slice %29 {offsets = [0, 3], sizes = [8, 1], strides = [1, 1]} : vector<8x8xf32> to vector<8x1xf32>
    %69 = vector.extract_strided_slice %35 {offsets = [3, 0], sizes = [1, 8], strides = [1, 1]} : vector<8x8xf32> to vector<1x8xf32>
    %70 = vector.broadcast %68 : vector<8x1xf32> to vector<8x8xf32>
    %71 = vector.broadcast %69 : vector<1x8xf32> to vector<8x8xf32>
    %72 = arith.addf %70, %71 : vector<8x8xf32>
    %73 = math.tanh %72 : vector<8x8xf32>
    %74 = vector.broadcast %67 : f32 to vector<8x8xf32>
    %75 = arith.mulf %74, %73 : vector<8x8xf32>
    %76 = arith.addf %66, %75 : vector<8x8xf32>
    %c4 = arith.constant 4 : index
    %77 = memref.load %arg14[%c4] : memref<8xf32, #tpu.memory_space<smem>>
    %78 = vector.extract_strided_slice %29 {offsets = [0, 4], sizes = [8, 1], strides = [1, 1]} : vector<8x8xf32> to vector<8x1xf32>
    %79 = vector.extract_strided_slice %35 {offsets = [4, 0], sizes = [1, 8], strides = [1, 1]} : vector<8x8xf32> to vector<1x8xf32>
    %80 = vector.broadcast %78 : vector<8x1xf32> to vector<8x8xf32>
    %81 = vector.broadcast %79 : vector<1x8xf32> to vector<8x8xf32>
    %82 = arith.addf %80, %81 : vector<8x8xf32>
    %83 = math.tanh %82 : vector<8x8xf32>
    %84 = vector.broadcast %77 : f32 to vector<8x8xf32>
    %85 = arith.mulf %84, %83 : vector<8x8xf32>
    %86 = arith.addf %76, %85 : vector<8x8xf32>
    %c5 = arith.constant 5 : index
    %87 = memref.load %arg14[%c5] : memref<8xf32, #tpu.memory_space<smem>>
    %88 = vector.extract_strided_slice %29 {offsets = [0, 5], sizes = [8, 1], strides = [1, 1]} : vector<8x8xf32> to vector<8x1xf32>
    %89 = vector.extract_strided_slice %35 {offsets = [5, 0], sizes = [1, 8], strides = [1, 1]} : vector<8x8xf32> to vector<1x8xf32>
    %90 = vector.broadcast %88 : vector<8x1xf32> to vector<8x8xf32>
    %91 = vector.broadcast %89 : vector<1x8xf32> to vector<8x8xf32>
    %92 = arith.addf %90, %91 : vector<8x8xf32>
    %93 = math.tanh %92 : vector<8x8xf32>
    %94 = vector.broadcast %87 : f32 to vector<8x8xf32>
    %95 = arith.mulf %94, %93 : vector<8x8xf32>
    %96 = arith.addf %86, %95 : vector<8x8xf32>
    %c6 = arith.constant 6 : index
    %97 = memref.load %arg14[%c6] : memref<8xf32, #tpu.memory_space<smem>>
    %98 = vector.extract_strided_slice %29 {offsets = [0, 6], sizes = [8, 1], strides = [1, 1]} : vector<8x8xf32> to vector<8x1xf32>
    %99 = vector.extract_strided_slice %35 {offsets = [6, 0], sizes = [1, 8], strides = [1, 1]} : vector<8x8xf32> to vector<1x8xf32>
    %100 = vector.broadcast %98 : vector<8x1xf32> to vector<8x8xf32>
    %101 = vector.broadcast %99 : vector<1x8xf32> to vector<8x8xf32>
    %102 = arith.addf %100, %101 : vector<8x8xf32>
    %103 = math.tanh %102 : vector<8x8xf32>
    %104 = vector.broadcast %97 : f32 to vector<8x8xf32>
    %105 = arith.mulf %104, %103 : vector<8x8xf32>
    %106 = arith.addf %96, %105 : vector<8x8xf32>
    %c7 = arith.constant 7 : index
    %107 = memref.load %arg14[%c7] : memref<8xf32, #tpu.memory_space<smem>>
    %108 = vector.extract_strided_slice %29 {offsets = [0, 7], sizes = [8, 1], strides = [1, 1]} : vector<8x8xf32> to vector<8x1xf32>
    %109 = vector.extract_strided_slice %35 {offsets = [7, 0], sizes = [1, 8], strides = [1, 1]} : vector<8x8xf32> to vector<1x8xf32>
    %110 = vector.broadcast %108 : vector<8x1xf32> to vector<8x8xf32>
    %111 = vector.broadcast %109 : vector<1x8xf32> to vector<8x8xf32>
    %112 = arith.addf %110, %111 : vector<8x8xf32>
    %113 = math.tanh %112 : vector<8x8xf32>
    %114 = vector.broadcast %107 : f32 to vector<8x8xf32>
    %115 = arith.mulf %114, %113 : vector<8x8xf32>
    %116 = arith.addf %106, %115 : vector<8x8xf32>
    %cst_34 = arith.constant dense<0xFF800000> : vector<8xf32>
    %117 = vector.multi_reduction <maximumf>, %116, %cst_34 [1] : vector<8x8xf32> to vector<8xf32>
    %118 = vector.shape_cast %117 : vector<8xf32> to vector<8x1xf32>
    %119 = vector.broadcast %118 : vector<8x1xf32> to vector<8x8xf32>
    %120 = arith.subf %116, %119 : vector<8x8xf32>
    %121 = math.exp %120 : vector<8x8xf32>
    %cst_35 = arith.constant dense<0.000000e+00> : vector<8xf32>
    %122 = vector.multi_reduction <add>, %121, %cst_35 [1] : vector<8x8xf32> to vector<8xf32>
    %123 = vector.shape_cast %122 : vector<8xf32> to vector<8x1xf32>
    %124 = tpu.reciprocal %123 {approx = true} : vector<8x1xf32> -> vector<8x1xf32>
    %125 = arith.mulf %123, %124 : vector<8x1xf32>
    %cst_36 = arith.constant 2.000000e+00 : f32
    %126 = vector.broadcast %cst_36 : f32 to vector<8x1xf32>
    %127 = arith.subf %126, %125 : vector<8x1xf32>
    %128 = arith.mulf %124, %127 : vector<8x1xf32>
    %129 = vector.broadcast %128 : vector<8x1xf32> to vector<8x8xf32>
    %130 = arith.mulf %121, %129 : vector<8x8xf32>
    %c0_37 = arith.constant 0 : index
    %c0_38 = arith.constant 0 : index
    %c0_39 = arith.constant 0 : index
    %c0_40 = arith.constant 0 : index
    %131 = vector.load %arg19[%c0_37, %c0_38, %c0_39, %c0_40] : memref<1x4x8x8xf32, #tpu.memory_space<vmem>>, vector<1x1x8x8xf32>
    %132 = vector.shape_cast %131 : vector<1x1x8x8xf32> to vector<8x8xf32>
    %133 = vector.shape_cast %130 : vector<8x8xf32> to vector<1x1x8x8xf32>
    tpu.vector_store %arg19[%c0_37, %c0_38, %c0_39, %c0_40], %133 {strides = array<i32>} : memref<1x4x8x8xf32, #tpu.memory_space<vmem>>, vector<1x1x8x8xf32>,
    %cst_41 = arith.constant dense<0.000000e+00> : vector<8x8xf32>
    %134 = tpu.matmul %130, %24, %cst_41 {dimension_numbers = #tpu.dot_dimension_numbers<[1], [0], [0], [1], [0, 0, 1, 1], [], []>} : vector<8x8xf32>, vector<8x8xf32>, vector<8x8xf32> -> vector<8x8xf32>
    %135 = vector.extract_strided_slice %10 {offsets = [0, 8], sizes = [8, 8], strides = [1, 1]} : vector<8x32xf32> to vector<8x8xf32>
    %136 = vector.extract_strided_slice %15 {offsets = [0, 8], sizes = [8, 8], strides = [1, 1]} : vector<8x32xf32> to vector<8x8xf32>
    %137 = vector.extract_strided_slice %20 {offsets = [0, 8], sizes = [8, 8], strides = [1, 1]} : vector<8x32xf32> to vector<8x8xf32>
    %c0_42 = arith.constant 0 : index
    %c0_43 = arith.constant 0 : index
    %138 = vector.load %arg10[%c0_42, %c0_43] : memref<8x8xf32, #tpu.memory_space<vmem>>, vector<8x8xf32>
    %cst_44 = arith.constant dense<0.000000e+00> : vector<8x8xf32>
    %139 = tpu.matmul %135, %138, %cst_44 {dimension_numbers = #tpu.dot_dimension_numbers<[1], [0], [0], [1], [0, 0, 1, 1], [], []>} : vector<8x8xf32>, vector<8x8xf32>, vector<8x8xf32> -> vector<8x8xf32>
    %c0_45 = arith.constant 0 : index
    %c0_46 = arith.constant 0 : index
    %140 = vector.load %arg11[%c0_45, %c0_46] : memref<1x8xf32, #tpu.memory_space<vmem>>, vector<1x8xf32>
    %141 = vector.broadcast %140 : vector<1x8xf32> to vector<8x8xf32>
    %142 = arith.addf %139, %141 : vector<8x8xf32>
    %c0_47 = arith.constant 0 : index
    %c0_48 = arith.constant 0 : index
    %143 = vector.load %arg12[%c0_47, %c0_48] : memref<8x8xf32, #tpu.memory_space<vmem>>, vector<8x8xf32>
    %cst_49 = arith.constant dense<0.000000e+00> : vector<8x8xf32>
    %144 = tpu.matmul %136, %143, %cst_49 {dimension_numbers = #tpu.dot_dimension_numbers<[1], [0], [0], [1], [0, 0, 1, 1], [], []>} : vector<8x8xf32>, vector<8x8xf32>, vector<8x8xf32> -> vector<8x8xf32>
    %c0_50 = arith.constant 0 : index
    %c0_51 = arith.constant 0 : index
    %145 = vector.load %arg13[%c0_50, %c0_51] : memref<1x8xf32, #tpu.memory_space<vmem>>, vector<1x8xf32>
    %146 = vector.broadcast %145 : vector<1x8xf32> to vector<8x8xf32>
    %147 = arith.addf %144, %146 : vector<8x8xf32>
    %148 = tpu.transpose %147, [1, 0] : vector<8x8xf32> -> vector<8x8xf32>
    %149 = vector.broadcast %21 : f32 to vector<8x8xf32>
    %c0_52 = arith.constant 0 : index
    %150 = memref.load %arg14[%c0_52] : memref<8xf32, #tpu.memory_space<smem>>
    %151 = vector.extract_strided_slice %142 {offsets = [0, 0], sizes = [8, 1], strides = [1, 1]} : vector<8x8xf32> to vector<8x1xf32>
    %152 = vector.extract_strided_slice %148 {offsets = [0, 0], sizes = [1, 8], strides = [1, 1]} : vector<8x8xf32> to vector<1x8xf32>
    %153 = vector.broadcast %151 : vector<8x1xf32> to vector<8x8xf32>
    %154 = vector.broadcast %152 : vector<1x8xf32> to vector<8x8xf32>
    %155 = arith.addf %153, %154 : vector<8x8xf32>
    %156 = math.tanh %155 : vector<8x8xf32>
    %157 = vector.broadcast %150 : f32 to vector<8x8xf32>
    %158 = arith.mulf %157, %156 : vector<8x8xf32>
    %159 = arith.addf %149, %158 : vector<8x8xf32>
    %c1_53 = arith.constant 1 : index
    %160 = memref.load %arg14[%c1_53] : memref<8xf32, #tpu.memory_space<smem>>
    %161 = vector.extract_strided_slice %142 {offsets = [0, 1], sizes = [8, 1], strides = [1, 1]} : vector<8x8xf32> to vector<8x1xf32>
    %162 = vector.extract_strided_slice %148 {offsets = [1, 0], sizes = [1, 8], strides = [1, 1]} : vector<8x8xf32> to vector<1x8xf32>
    %163 = vector.broadcast %161 : vector<8x1xf32> to vector<8x8xf32>
    %164 = vector.broadcast %162 : vector<1x8xf32> to vector<8x8xf32>
    %165 = arith.addf %163, %164 : vector<8x8xf32>
    %166 = math.tanh %165 : vector<8x8xf32>
    %167 = vector.broadcast %160 : f32 to vector<8x8xf32>
    %168 = arith.mulf %167, %166 : vector<8x8xf32>
    %169 = arith.addf %159, %168 : vector<8x8xf32>
    %c2_54 = arith.constant 2 : index
    %170 = memref.load %arg14[%c2_54] : memref<8xf32, #tpu.memory_space<smem>>
    %171 = vector.extract_strided_slice %142 {offsets = [0, 2], sizes = [8, 1], strides = [1, 1]} : vector<8x8xf32> to vector<8x1xf32>
    %172 = vector.extract_strided_slice %148 {offsets = [2, 0], sizes = [1, 8], strides = [1, 1]} : vector<8x8xf32> to vector<1x8xf32>
    %173 = vector.broadcast %171 : vector<8x1xf32> to vector<8x8xf32>
    %174 = vector.broadcast %172 : vector<1x8xf32> to vector<8x8xf32>
    %175 = arith.addf %173, %174 : vector<8x8xf32>
    %176 = math.tanh %175 : vector<8x8xf32>
    %177 = vector.broadcast %170 : f32 to vector<8x8xf32>
    %178 = arith.mulf %177, %176 : vector<8x8xf32>
    %179 = arith.addf %169, %178 : vector<8x8xf32>
    %c3_55 = arith.constant 3 : index
    %180 = memref.load %arg14[%c3_55] : memref<8xf32, #tpu.memory_space<smem>>
    %181 = vector.extract_strided_slice %142 {offsets = [0, 3], sizes = [8, 1], strides = [1, 1]} : vector<8x8xf32> to vector<8x1xf32>
    %182 = vector.extract_strided_slice %148 {offsets = [3, 0], sizes = [1, 8], strides = [1, 1]} : vector<8x8xf32> to vector<1x8xf32>
    %183 = vector.broadcast %181 : vector<8x1xf32> to vector<8x8xf32>
    %184 = vector.broadcast %182 : vector<1x8xf32> to vector<8x8xf32>
    %185 = arith.addf %183, %184 : vector<8x8xf32>
    %186 = math.tanh %185 : vector<8x8xf32>
    %187 = vector.broadcast %180 : f32 to vector<8x8xf32>
    %188 = arith.mulf %187, %186 : vector<8x8xf32>
    %189 = arith.addf %179, %188 : vector<8x8xf32>
    %c4_56 = arith.constant 4 : index
    %190 = memref.load %arg14[%c4_56] : memref<8xf32, #tpu.memory_space<smem>>
    %191 = vector.extract_strided_slice %142 {offsets = [0, 4], sizes = [8, 1], strides = [1, 1]} : vector<8x8xf32> to vector<8x1xf32>
    %192 = vector.extract_strided_slice %148 {offsets = [4, 0], sizes = [1, 8], strides = [1, 1]} : vector<8x8xf32> to vector<1x8xf32>
    %193 = vector.broadcast %191 : vector<8x1xf32> to vector<8x8xf32>
    %194 = vector.broadcast %192 : vector<1x8xf32> to vector<8x8xf32>
    %195 = arith.addf %193, %194 : vector<8x8xf32>
    %196 = math.tanh %195 : vector<8x8xf32>
    %197 = vector.broadcast %190 : f32 to vector<8x8xf32>
    %198 = arith.mulf %197, %196 : vector<8x8xf32>
    %199 = arith.addf %189, %198 : vector<8x8xf32>
    %c5_57 = arith.constant 5 : index
    %200 = memref.load %arg14[%c5_57] : memref<8xf32, #tpu.memory_space<smem>>
    %201 = vector.extract_strided_slice %142 {offsets = [0, 5], sizes = [8, 1], strides = [1, 1]} : vector<8x8xf32> to vector<8x1xf32>
    %202 = vector.extract_strided_slice %148 {offsets = [5, 0], sizes = [1, 8], strides = [1, 1]} : vector<8x8xf32> to vector<1x8xf32>
    %203 = vector.broadcast %201 : vector<8x1xf32> to vector<8x8xf32>
    %204 = vector.broadcast %202 : vector<1x8xf32> to vector<8x8xf32>
    %205 = arith.addf %203, %204 : vector<8x8xf32>
    %206 = math.tanh %205 : vector<8x8xf32>
    %207 = vector.broadcast %200 : f32 to vector<8x8xf32>
    %208 = arith.mulf %207, %206 : vector<8x8xf32>
    %209 = arith.addf %199, %208 : vector<8x8xf32>
    %c6_58 = arith.constant 6 : index
    %210 = memref.load %arg14[%c6_58] : memref<8xf32, #tpu.memory_space<smem>>
    %211 = vector.extract_strided_slice %142 {offsets = [0, 6], sizes = [8, 1], strides = [1, 1]} : vector<8x8xf32> to vector<8x1xf32>
    %212 = vector.extract_strided_slice %148 {offsets = [6, 0], sizes = [1, 8], strides = [1, 1]} : vector<8x8xf32> to vector<1x8xf32>
    %213 = vector.broadcast %211 : vector<8x1xf32> to vector<8x8xf32>
    %214 = vector.broadcast %212 : vector<1x8xf32> to vector<8x8xf32>
    %215 = arith.addf %213, %214 : vector<8x8xf32>
    %216 = math.tanh %215 : vector<8x8xf32>
    %217 = vector.broadcast %210 : f32 to vector<8x8xf32>
    %218 = arith.mulf %217, %216 : vector<8x8xf32>
    %219 = arith.addf %209, %218 : vector<8x8xf32>
    %c7_59 = arith.constant 7 : index
    %220 = memref.load %arg14[%c7_59] : memref<8xf32, #tpu.memory_space<smem>>
    %221 = vector.extract_strided_slice %142 {offsets = [0, 7], sizes = [8, 1], strides = [1, 1]} : vector<8x8xf32> to vector<8x1xf32>
    %222 = vector.extract_strided_slice %148 {offsets = [7, 0], sizes = [1, 8], strides = [1, 1]} : vector<8x8xf32> to vector<1x8xf32>
    %223 = vector.broadcast %221 : vector<8x1xf32> to vector<8x8xf32>
    %224 = vector.broadcast %222 : vector<1x8xf32> to vector<8x8xf32>
    %225 = arith.addf %223, %224 : vector<8x8xf32>
    %226 = math.tanh %225 : vector<8x8xf32>
    %227 = vector.broadcast %220 : f32 to vector<8x8xf32>
    %228 = arith.mulf %227, %226 : vector<8x8xf32>
    %229 = arith.addf %219, %228 : vector<8x8xf32>
    %cst_60 = arith.constant dense<0xFF800000> : vector<8xf32>
    %230 = vector.multi_reduction <maximumf>, %229, %cst_60 [1] : vector<8x8xf32> to vector<8xf32>
    %231 = vector.shape_cast %230 : vector<8xf32> to vector<8x1xf32>
    %232 = vector.broadcast %231 : vector<8x1xf32> to vector<8x8xf32>
    %233 = arith.subf %229, %232 : vector<8x8xf32>
    %234 = math.exp %233 : vector<8x8xf32>
    %cst_61 = arith.constant dense<0.000000e+00> : vector<8xf32>
    %235 = vector.multi_reduction <add>, %234, %cst_61 [1] : vector<8x8xf32> to vector<8xf32>
    %236 = vector.shape_cast %235 : vector<8xf32> to vector<8x1xf32>
    %237 = tpu.reciprocal %236 {approx = true} : vector<8x1xf32> -> vector<8x1xf32>
    %238 = arith.mulf %236, %237 : vector<8x1xf32>
    %cst_62 = arith.constant 2.000000e+00 : f32
    %239 = vector.broadcast %cst_62 : f32 to vector<8x1xf32>
    %240 = arith.subf %239, %238 : vector<8x1xf32>
    %241 = arith.mulf %237, %240 : vector<8x1xf32>
    %242 = vector.broadcast %241 : vector<8x1xf32> to vector<8x8xf32>
    %243 = arith.mulf %234, %242 : vector<8x8xf32>
    %c0_63 = arith.constant 0 : index
    %c1_64 = arith.constant 1 : index
    %c0_65 = arith.constant 0 : index
    %c0_66 = arith.constant 0 : index
    %244 = vector.load %arg19[%c0_63, %c1_64, %c0_65, %c0_66] : memref<1x4x8x8xf32, #tpu.memory_space<vmem>>, vector<1x1x8x8xf32>
    %245 = vector.shape_cast %244 : vector<1x1x8x8xf32> to vector<8x8xf32>
    %246 = vector.shape_cast %243 : vector<8x8xf32> to vector<1x1x8x8xf32>
    tpu.vector_store %arg19[%c0_63, %c1_64, %c0_65, %c0_66], %246 {strides = array<i32>} : memref<1x4x8x8xf32, #tpu.memory_space<vmem>>, vector<1x1x8x8xf32>,
    %cst_67 = arith.constant dense<0.000000e+00> : vector<8x8xf32>
    %247 = tpu.matmul %243, %137, %cst_67 {dimension_numbers = #tpu.dot_dimension_numbers<[1], [0], [0], [1], [0, 0, 1, 1], [], []>} : vector<8x8xf32>, vector<8x8xf32>, vector<8x8xf32> -> vector<8x8xf32>
    %248 = vector.extract_strided_slice %10 {offsets = [0, 16], sizes = [8, 8], strides = [1, 1]} : vector<8x32xf32> to vector<8x8xf32>
    %249 = vector.extract_strided_slice %15 {offsets = [0, 16], sizes = [8, 8], strides = [1, 1]} : vector<8x32xf32> to vector<8x8xf32>
    %250 = vector.extract_strided_slice %20 {offsets = [0, 16], sizes = [8, 8], strides = [1, 1]} : vector<8x32xf32> to vector<8x8xf32>
    %c0_68 = arith.constant 0 : index
    %c0_69 = arith.constant 0 : index
    %251 = vector.load %arg10[%c0_68, %c0_69] : memref<8x8xf32, #tpu.memory_space<vmem>>, vector<8x8xf32>
    %cst_70 = arith.constant dense<0.000000e+00> : vector<8x8xf32>
    %252 = tpu.matmul %248, %251, %cst_70 {dimension_numbers = #tpu.dot_dimension_numbers<[1], [0], [0], [1], [0, 0, 1, 1], [], []>} : vector<8x8xf32>, vector<8x8xf32>, vector<8x8xf32> -> vector<8x8xf32>
    %c0_71 = arith.constant 0 : index
    %c0_72 = arith.constant 0 : index
    %253 = vector.load %arg11[%c0_71, %c0_72] : memref<1x8xf32, #tpu.memory_space<vmem>>, vector<1x8xf32>
    %254 = vector.broadcast %253 : vector<1x8xf32> to vector<8x8xf32>
    %255 = arith.addf %252, %254 : vector<8x8xf32>
    %c0_73 = arith.constant 0 : index
    %c0_74 = arith.constant 0 : index
    %256 = vector.load %arg12[%c0_73, %c0_74] : memref<8x8xf32, #tpu.memory_space<vmem>>, vector<8x8xf32>
    %cst_75 = arith.constant dense<0.000000e+00> : vector<8x8xf32>
    %257 = tpu.matmul %249, %256, %cst_75 {dimension_numbers = #tpu.dot_dimension_numbers<[1], [0], [0], [1], [0, 0, 1, 1], [], []>} : vector<8x8xf32>, vector<8x8xf32>, vector<8x8xf32> -> vector<8x8xf32>
    %c0_76 = arith.constant 0 : index
    %c0_77 = arith.constant 0 : index
    %258 = vector.load %arg13[%c0_76, %c0_77] : memref<1x8xf32, #tpu.memory_space<vmem>>, vector<1x8xf32>
    %259 = vector.broadcast %258 : vector<1x8xf32> to vector<8x8xf32>
    %260 = arith.addf %257, %259 : vector<8x8xf32>
    %261 = tpu.transpose %260, [1, 0] : vector<8x8xf32> -> vector<8x8xf32>
    %262 = vector.broadcast %21 : f32 to vector<8x8xf32>
    %c0_78 = arith.constant 0 : index
    %263 = memref.load %arg14[%c0_78] : memref<8xf32, #tpu.memory_space<smem>>
    %264 = vector.extract_strided_slice %255 {offsets = [0, 0], sizes = [8, 1], strides = [1, 1]} : vector<8x8xf32> to vector<8x1xf32>
    %265 = vector.extract_strided_slice %261 {offsets = [0, 0], sizes = [1, 8], strides = [1, 1]} : vector<8x8xf32> to vector<1x8xf32>
    %266 = vector.broadcast %264 : vector<8x1xf32> to vector<8x8xf32>
    %267 = vector.broadcast %265 : vector<1x8xf32> to vector<8x8xf32>
    %268 = arith.addf %266, %267 : vector<8x8xf32>
    %269 = math.tanh %268 : vector<8x8xf32>
    %270 = vector.broadcast %263 : f32 to vector<8x8xf32>
    %271 = arith.mulf %270, %269 : vector<8x8xf32>
    %272 = arith.addf %262, %271 : vector<8x8xf32>
    %c1_79 = arith.constant 1 : index
    %273 = memref.load %arg14[%c1_79] : memref<8xf32, #tpu.memory_space<smem>>
    %274 = vector.extract_strided_slice %255 {offsets = [0, 1], sizes = [8, 1], strides = [1, 1]} : vector<8x8xf32> to vector<8x1xf32>
    %275 = vector.extract_strided_slice %261 {offsets = [1, 0], sizes = [1, 8], strides = [1, 1]} : vector<8x8xf32> to vector<1x8xf32>
    %276 = vector.broadcast %274 : vector<8x1xf32> to vector<8x8xf32>
    %277 = vector.broadcast %275 : vector<1x8xf32> to vector<8x8xf32>
    %278 = arith.addf %276, %277 : vector<8x8xf32>
    %279 = math.tanh %278 : vector<8x8xf32>
    %280 = vector.broadcast %273 : f32 to vector<8x8xf32>
    %281 = arith.mulf %280, %279 : vector<8x8xf32>
    %282 = arith.addf %272, %281 : vector<8x8xf32>
    %c2_80 = arith.constant 2 : index
    %283 = memref.load %arg14[%c2_80] : memref<8xf32, #tpu.memory_space<smem>>
    %284 = vector.extract_strided_slice %255 {offsets = [0, 2], sizes = [8, 1], strides = [1, 1]} : vector<8x8xf32> to vector<8x1xf32>
    %285 = vector.extract_strided_slice %261 {offsets = [2, 0], sizes = [1, 8], strides = [1, 1]} : vector<8x8xf32> to vector<1x8xf32>
    %286 = vector.broadcast %284 : vector<8x1xf32> to vector<8x8xf32>
    %287 = vector.broadcast %285 : vector<1x8xf32> to vector<8x8xf32>
    %288 = arith.addf %286, %287 : vector<8x8xf32>
    %289 = math.tanh %288 : vector<8x8xf32>
    %290 = vector.broadcast %283 : f32 to vector<8x8xf32>
    %291 = arith.mulf %290, %289 : vector<8x8xf32>
    %292 = arith.addf %282, %291 : vector<8x8xf32>
    %c3_81 = arith.constant 3 : index
    %293 = memref.load %arg14[%c3_81] : memref<8xf32, #tpu.memory_space<smem>>
    %294 = vector.extract_strided_slice %255 {offsets = [0, 3], sizes = [8, 1], strides = [1, 1]} : vector<8x8xf32> to vector<8x1xf32>
    %295 = vector.extract_strided_slice %261 {offsets = [3, 0], sizes = [1, 8], strides = [1, 1]} : vector<8x8xf32> to vector<1x8xf32>
    %296 = vector.broadcast %294 : vector<8x1xf32> to vector<8x8xf32>
    %297 = vector.broadcast %295 : vector<1x8xf32> to vector<8x8xf32>
    %298 = arith.addf %296, %297 : vector<8x8xf32>
    %299 = math.tanh %298 : vector<8x8xf32>
    %300 = vector.broadcast %293 : f32 to vector<8x8xf32>
    %301 = arith.mulf %300, %299 : vector<8x8xf32>
    %302 = arith.addf %292, %301 : vector<8x8xf32>
    %c4_82 = arith.constant 4 : index
    %303 = memref.load %arg14[%c4_82] : memref<8xf32, #tpu.memory_space<smem>>
    %304 = vector.extract_strided_slice %255 {offsets = [0, 4], sizes = [8, 1], strides = [1, 1]} : vector<8x8xf32> to vector<8x1xf32>
    %305 = vector.extract_strided_slice %261 {offsets = [4, 0], sizes = [1, 8], strides = [1, 1]} : vector<8x8xf32> to vector<1x8xf32>
    %306 = vector.broadcast %304 : vector<8x1xf32> to vector<8x8xf32>
    %307 = vector.broadcast %305 : vector<1x8xf32> to vector<8x8xf32>
    %308 = arith.addf %306, %307 : vector<8x8xf32>
    %309 = math.tanh %308 : vector<8x8xf32>
    %310 = vector.broadcast %303 : f32 to vector<8x8xf32>
    %311 = arith.mulf %310, %309 : vector<8x8xf32>
    %312 = arith.addf %302, %311 : vector<8x8xf32>
    %c5_83 = arith.constant 5 : index
    %313 = memref.load %arg14[%c5_83] : memref<8xf32, #tpu.memory_space<smem>>
    %314 = vector.extract_strided_slice %255 {offsets = [0, 5], sizes = [8, 1], strides = [1, 1]} : vector<8x8xf32> to vector<8x1xf32>
    %315 = vector.extract_strided_slice %261 {offsets = [5, 0], sizes = [1, 8], strides = [1, 1]} : vector<8x8xf32> to vector<1x8xf32>
    %316 = vector.broadcast %314 : vector<8x1xf32> to vector<8x8xf32>
    %317 = vector.broadcast %315 : vector<1x8xf32> to vector<8x8xf32>
    %318 = arith.addf %316, %317 : vector<8x8xf32>
    %319 = math.tanh %318 : vector<8x8xf32>
    %320 = vector.broadcast %313 : f32 to vector<8x8xf32>
    %321 = arith.mulf %320, %319 : vector<8x8xf32>
    %322 = arith.addf %312, %321 : vector<8x8xf32>
    %c6_84 = arith.constant 6 : index
    %323 = memref.load %arg14[%c6_84] : memref<8xf32, #tpu.memory_space<smem>>
    %324 = vector.extract_strided_slice %255 {offsets = [0, 6], sizes = [8, 1], strides = [1, 1]} : vector<8x8xf32> to vector<8x1xf32>
    %325 = vector.extract_strided_slice %261 {offsets = [6, 0], sizes = [1, 8], strides = [1, 1]} : vector<8x8xf32> to vector<1x8xf32>
    %326 = vector.broadcast %324 : vector<8x1xf32> to vector<8x8xf32>
    %327 = vector.broadcast %325 : vector<1x8xf32> to vector<8x8xf32>
    %328 = arith.addf %326, %327 : vector<8x8xf32>
    %329 = math.tanh %328 : vector<8x8xf32>
    %330 = vector.broadcast %323 : f32 to vector<8x8xf32>
    %331 = arith.mulf %330, %329 : vector<8x8xf32>
    %332 = arith.addf %322, %331 : vector<8x8xf32>
    %c7_85 = arith.constant 7 : index
    %333 = memref.load %arg14[%c7_85] : memref<8xf32, #tpu.memory_space<smem>>
    %334 = vector.extract_strided_slice %255 {offsets = [0, 7], sizes = [8, 1], strides = [1, 1]} : vector<8x8xf32> to vector<8x1xf32>
    %335 = vector.extract_strided_slice %261 {offsets = [7, 0], sizes = [1, 8], strides = [1, 1]} : vector<8x8xf32> to vector<1x8xf32>
    %336 = vector.broadcast %334 : vector<8x1xf32> to vector<8x8xf32>
    %337 = vector.broadcast %335 : vector<1x8xf32> to vector<8x8xf32>
    %338 = arith.addf %336, %337 : vector<8x8xf32>
    %339 = math.tanh %338 : vector<8x8xf32>
    %340 = vector.broadcast %333 : f32 to vector<8x8xf32>
    %341 = arith.mulf %340, %339 : vector<8x8xf32>
    %342 = arith.addf %332, %341 : vector<8x8xf32>
    %cst_86 = arith.constant dense<0xFF800000> : vector<8xf32>
    %343 = vector.multi_reduction <maximumf>, %342, %cst_86 [1] : vector<8x8xf32> to vector<8xf32>
    %344 = vector.shape_cast %343 : vector<8xf32> to vector<8x1xf32>
    %345 = vector.broadcast %344 : vector<8x1xf32> to vector<8x8xf32>
    %346 = arith.subf %342, %345 : vector<8x8xf32>
    %347 = math.exp %346 : vector<8x8xf32>
    %cst_87 = arith.constant dense<0.000000e+00> : vector<8xf32>
    %348 = vector.multi_reduction <add>, %347, %cst_87 [1] : vector<8x8xf32> to vector<8xf32>
    %349 = vector.shape_cast %348 : vector<8xf32> to vector<8x1xf32>
    %350 = tpu.reciprocal %349 {approx = true} : vector<8x1xf32> -> vector<8x1xf32>
    %351 = arith.mulf %349, %350 : vector<8x1xf32>
    %cst_88 = arith.constant 2.000000e+00 : f32
    %352 = vector.broadcast %cst_88 : f32 to vector<8x1xf32>
    %353 = arith.subf %352, %351 : vector<8x1xf32>
    %354 = arith.mulf %350, %353 : vector<8x1xf32>
    %355 = vector.broadcast %354 : vector<8x1xf32> to vector<8x8xf32>
    %356 = arith.mulf %347, %355 : vector<8x8xf32>
    %c0_89 = arith.constant 0 : index
    %c2_90 = arith.constant 2 : index
    %c0_91 = arith.constant 0 : index
    %c0_92 = arith.constant 0 : index
    %357 = vector.load %arg19[%c0_89, %c2_90, %c0_91, %c0_92] : memref<1x4x8x8xf32, #tpu.memory_space<vmem>>, vector<1x1x8x8xf32>
    %358 = vector.shape_cast %357 : vector<1x1x8x8xf32> to vector<8x8xf32>
    %359 = vector.shape_cast %356 : vector<8x8xf32> to vector<1x1x8x8xf32>
    tpu.vector_store %arg19[%c0_89, %c2_90, %c0_91, %c0_92], %359 {strides = array<i32>} : memref<1x4x8x8xf32, #tpu.memory_space<vmem>>, vector<1x1x8x8xf32>,
    %cst_93 = arith.constant dense<0.000000e+00> : vector<8x8xf32>
    %360 = tpu.matmul %356, %250, %cst_93 {dimension_numbers = #tpu.dot_dimension_numbers<[1], [0], [0], [1], [0, 0, 1, 1], [], []>} : vector<8x8xf32>, vector<8x8xf32>, vector<8x8xf32> -> vector<8x8xf32>
    %361 = vector.extract_strided_slice %10 {offsets = [0, 24], sizes = [8, 8], strides = [1, 1]} : vector<8x32xf32> to vector<8x8xf32>
    %362 = vector.extract_strided_slice %15 {offsets = [0, 24], sizes = [8, 8], strides = [1, 1]} : vector<8x32xf32> to vector<8x8xf32>
    %363 = vector.extract_strided_slice %20 {offsets = [0, 24], sizes = [8, 8], strides = [1, 1]} : vector<8x32xf32> to vector<8x8xf32>
    %c0_94 = arith.constant 0 : index
    %c0_95 = arith.constant 0 : index
    %364 = vector.load %arg10[%c0_94, %c0_95] : memref<8x8xf32, #tpu.memory_space<vmem>>, vector<8x8xf32>
    %cst_96 = arith.constant dense<0.000000e+00> : vector<8x8xf32>
    %365 = tpu.matmul %361, %364, %cst_96 {dimension_numbers = #tpu.dot_dimension_numbers<[1], [0], [0], [1], [0, 0, 1, 1], [], []>} : vector<8x8xf32>, vector<8x8xf32>, vector<8x8xf32> -> vector<8x8xf32>
    %c0_97 = arith.constant 0 : index
    %c0_98 = arith.constant 0 : index
    %366 = vector.load %arg11[%c0_97, %c0_98] : memref<1x8xf32, #tpu.memory_space<vmem>>, vector<1x8xf32>
    %367 = vector.broadcast %366 : vector<1x8xf32> to vector<8x8xf32>
    %368 = arith.addf %365, %367 : vector<8x8xf32>
    %c0_99 = arith.constant 0 : index
    %c0_100 = arith.constant 0 : index
    %369 = vector.load %arg12[%c0_99, %c0_100] : memref<8x8xf32, #tpu.memory_space<vmem>>, vector<8x8xf32>
    %cst_101 = arith.constant dense<0.000000e+00> : vector<8x8xf32>
    %370 = tpu.matmul %362, %369, %cst_101 {dimension_numbers = #tpu.dot_dimension_numbers<[1], [0], [0], [1], [0, 0, 1, 1], [], []>} : vector<8x8xf32>, vector<8x8xf32>, vector<8x8xf32> -> vector<8x8xf32>
    %c0_102 = arith.constant 0 : index
    %c0_103 = arith.constant 0 : index
    %371 = vector.load %arg13[%c0_102, %c0_103] : memref<1x8xf32, #tpu.memory_space<vmem>>, vector<1x8xf32>
    %372 = vector.broadcast %371 : vector<1x8xf32> to vector<8x8xf32>
    %373 = arith.addf %370, %372 : vector<8x8xf32>
    %374 = tpu.transpose %373, [1, 0] : vector<8x8xf32> -> vector<8x8xf32>
    %375 = vector.broadcast %21 : f32 to vector<8x8xf32>
    %c0_104 = arith.constant 0 : index
    %376 = memref.load %arg14[%c0_104] : memref<8xf32, #tpu.memory_space<smem>>
    %377 = vector.extract_strided_slice %368 {offsets = [0, 0], sizes = [8, 1], strides = [1, 1]} : vector<8x8xf32> to vector<8x1xf32>
    %378 = vector.extract_strided_slice %374 {offsets = [0, 0], sizes = [1, 8], strides = [1, 1]} : vector<8x8xf32> to vector<1x8xf32>
    %379 = vector.broadcast %377 : vector<8x1xf32> to vector<8x8xf32>
    %380 = vector.broadcast %378 : vector<1x8xf32> to vector<8x8xf32>
    %381 = arith.addf %379, %380 : vector<8x8xf32>
    %382 = math.tanh %381 : vector<8x8xf32>
    %383 = vector.broadcast %376 : f32 to vector<8x8xf32>
    %384 = arith.mulf %383, %382 : vector<8x8xf32>
    %385 = arith.addf %375, %384 : vector<8x8xf32>
    %c1_105 = arith.constant 1 : index
    %386 = memref.load %arg14[%c1_105] : memref<8xf32, #tpu.memory_space<smem>>
    %387 = vector.extract_strided_slice %368 {offsets = [0, 1], sizes = [8, 1], strides = [1, 1]} : vector<8x8xf32> to vector<8x1xf32>
    %388 = vector.extract_strided_slice %374 {offsets = [1, 0], sizes = [1, 8], strides = [1, 1]} : vector<8x8xf32> to vector<1x8xf32>
    %389 = vector.broadcast %387 : vector<8x1xf32> to vector<8x8xf32>
    %390 = vector.broadcast %388 : vector<1x8xf32> to vector<8x8xf32>
    %391 = arith.addf %389, %390 : vector<8x8xf32>
    %392 = math.tanh %391 : vector<8x8xf32>
    %393 = vector.broadcast %386 : f32 to vector<8x8xf32>
    %394 = arith.mulf %393, %392 : vector<8x8xf32>
    %395 = arith.addf %385, %394 : vector<8x8xf32>
    %c2_106 = arith.constant 2 : index
    %396 = memref.load %arg14[%c2_106] : memref<8xf32, #tpu.memory_space<smem>>
    %397 = vector.extract_strided_slice %368 {offsets = [0, 2], sizes = [8, 1], strides = [1, 1]} : vector<8x8xf32> to vector<8x1xf32>
    %398 = vector.extract_strided_slice %374 {offsets = [2, 0], sizes = [1, 8], strides = [1, 1]} : vector<8x8xf32> to vector<1x8xf32>
    %399 = vector.broadcast %397 : vector<8x1xf32> to vector<8x8xf32>
    %400 = vector.broadcast %398 : vector<1x8xf32> to vector<8x8xf32>
    %401 = arith.addf %399, %400 : vector<8x8xf32>
    %402 = math.tanh %401 : vector<8x8xf32>
    %403 = vector.broadcast %396 : f32 to vector<8x8xf32>
    %404 = arith.mulf %403, %402 : vector<8x8xf32>
    %405 = arith.addf %395, %404 : vector<8x8xf32>
    %c3_107 = arith.constant 3 : index
    %406 = memref.load %arg14[%c3_107] : memref<8xf32, #tpu.memory_space<smem>>
    %407 = vector.extract_strided_slice %368 {offsets = [0, 3], sizes = [8, 1], strides = [1, 1]} : vector<8x8xf32> to vector<8x1xf32>
    %408 = vector.extract_strided_slice %374 {offsets = [3, 0], sizes = [1, 8], strides = [1, 1]} : vector<8x8xf32> to vector<1x8xf32>
    %409 = vector.broadcast %407 : vector<8x1xf32> to vector<8x8xf32>
    %410 = vector.broadcast %408 : vector<1x8xf32> to vector<8x8xf32>
    %411 = arith.addf %409, %410 : vector<8x8xf32>
    %412 = math.tanh %411 : vector<8x8xf32>
    %413 = vector.broadcast %406 : f32 to vector<8x8xf32>
    %414 = arith.mulf %413, %412 : vector<8x8xf32>
    %415 = arith.addf %405, %414 : vector<8x8xf32>
    %c4_108 = arith.constant 4 : index
    %416 = memref.load %arg14[%c4_108] : memref<8xf32, #tpu.memory_space<smem>>
    %417 = vector.extract_strided_slice %368 {offsets = [0, 4], sizes = [8, 1], strides = [1, 1]} : vector<8x8xf32> to vector<8x1xf32>
    %418 = vector.extract_strided_slice %374 {offsets = [4, 0], sizes = [1, 8], strides = [1, 1]} : vector<8x8xf32> to vector<1x8xf32>
    %419 = vector.broadcast %417 : vector<8x1xf32> to vector<8x8xf32>
    %420 = vector.broadcast %418 : vector<1x8xf32> to vector<8x8xf32>
    %421 = arith.addf %419, %420 : vector<8x8xf32>
    %422 = math.tanh %421 : vector<8x8xf32>
    %423 = vector.broadcast %416 : f32 to vector<8x8xf32>
    %424 = arith.mulf %423, %422 : vector<8x8xf32>
    %425 = arith.addf %415, %424 : vector<8x8xf32>
    %c5_109 = arith.constant 5 : index
    %426 = memref.load %arg14[%c5_109] : memref<8xf32, #tpu.memory_space<smem>>
    %427 = vector.extract_strided_slice %368 {offsets = [0, 5], sizes = [8, 1], strides = [1, 1]} : vector<8x8xf32> to vector<8x1xf32>
    %428 = vector.extract_strided_slice %374 {offsets = [5, 0], sizes = [1, 8], strides = [1, 1]} : vector<8x8xf32> to vector<1x8xf32>
    %429 = vector.broadcast %427 : vector<8x1xf32> to vector<8x8xf32>
    %430 = vector.broadcast %428 : vector<1x8xf32> to vector<8x8xf32>
    %431 = arith.addf %429, %430 : vector<8x8xf32>
    %432 = math.tanh %431 : vector<8x8xf32>
    %433 = vector.broadcast %426 : f32 to vector<8x8xf32>
    %434 = arith.mulf %433, %432 : vector<8x8xf32>
    %435 = arith.addf %425, %434 : vector<8x8xf32>
    %c6_110 = arith.constant 6 : index
    %436 = memref.load %arg14[%c6_110] : memref<8xf32, #tpu.memory_space<smem>>
    %437 = vector.extract_strided_slice %368 {offsets = [0, 6], sizes = [8, 1], strides = [1, 1]} : vector<8x8xf32> to vector<8x1xf32>
    %438 = vector.extract_strided_slice %374 {offsets = [6, 0], sizes = [1, 8], strides = [1, 1]} : vector<8x8xf32> to vector<1x8xf32>
    %439 = vector.broadcast %437 : vector<8x1xf32> to vector<8x8xf32>
    %440 = vector.broadcast %438 : vector<1x8xf32> to vector<8x8xf32>
    %441 = arith.addf %439, %440 : vector<8x8xf32>
    %442 = math.tanh %441 : vector<8x8xf32>
    %443 = vector.broadcast %436 : f32 to vector<8x8xf32>
    %444 = arith.mulf %443, %442 : vector<8x8xf32>
    %445 = arith.addf %435, %444 : vector<8x8xf32>
    %c7_111 = arith.constant 7 : index
    %446 = memref.load %arg14[%c7_111] : memref<8xf32, #tpu.memory_space<smem>>
    %447 = vector.extract_strided_slice %368 {offsets = [0, 7], sizes = [8, 1], strides = [1, 1]} : vector<8x8xf32> to vector<8x1xf32>
    %448 = vector.extract_strided_slice %374 {offsets = [7, 0], sizes = [1, 8], strides = [1, 1]} : vector<8x8xf32> to vector<1x8xf32>
    %449 = vector.broadcast %447 : vector<8x1xf32> to vector<8x8xf32>
    %450 = vector.broadcast %448 : vector<1x8xf32> to vector<8x8xf32>
    %451 = arith.addf %449, %450 : vector<8x8xf32>
    %452 = math.tanh %451 : vector<8x8xf32>
    %453 = vector.broadcast %446 : f32 to vector<8x8xf32>
    %454 = arith.mulf %453, %452 : vector<8x8xf32>
    %455 = arith.addf %445, %454 : vector<8x8xf32>
    %cst_112 = arith.constant dense<0xFF800000> : vector<8xf32>
    %456 = vector.multi_reduction <maximumf>, %455, %cst_112 [1] : vector<8x8xf32> to vector<8xf32>
    %457 = vector.shape_cast %456 : vector<8xf32> to vector<8x1xf32>
    %458 = vector.broadcast %457 : vector<8x1xf32> to vector<8x8xf32>
    %459 = arith.subf %455, %458 : vector<8x8xf32>
    %460 = math.exp %459 : vector<8x8xf32>
    %cst_113 = arith.constant dense<0.000000e+00> : vector<8xf32>
    %461 = vector.multi_reduction <add>, %460, %cst_113 [1] : vector<8x8xf32> to vector<8xf32>
    %462 = vector.shape_cast %461 : vector<8xf32> to vector<8x1xf32>
    %463 = tpu.reciprocal %462 {approx = true} : vector<8x1xf32> -> vector<8x1xf32>
    %464 = arith.mulf %462, %463 : vector<8x1xf32>
    %cst_114 = arith.constant 2.000000e+00 : f32
    %465 = vector.broadcast %cst_114 : f32 to vector<8x1xf32>
    %466 = arith.subf %465, %464 : vector<8x1xf32>
    %467 = arith.mulf %463, %466 : vector<8x1xf32>
    %468 = vector.broadcast %467 : vector<8x1xf32> to vector<8x8xf32>
    %469 = arith.mulf %460, %468 : vector<8x8xf32>
    %c0_115 = arith.constant 0 : index
    %c3_116 = arith.constant 3 : index
    %c0_117 = arith.constant 0 : index
    %c0_118 = arith.constant 0 : index
    %470 = vector.load %arg19[%c0_115, %c3_116, %c0_117, %c0_118] : memref<1x4x8x8xf32, #tpu.memory_space<vmem>>, vector<1x1x8x8xf32>
    %471 = vector.shape_cast %470 : vector<1x1x8x8xf32> to vector<8x8xf32>
    %472 = vector.shape_cast %469 : vector<8x8xf32> to vector<1x1x8x8xf32>
    tpu.vector_store %arg19[%c0_115, %c3_116, %c0_117, %c0_118], %472 {strides = array<i32>} : memref<1x4x8x8xf32, #tpu.memory_space<vmem>>, vector<1x1x8x8xf32>,
    %cst_119 = arith.constant dense<0.000000e+00> : vector<8x8xf32>
    %473 = tpu.matmul %469, %363, %cst_119 {dimension_numbers = #tpu.dot_dimension_numbers<[1], [0], [0], [1], [0, 0, 1, 1], [], []>} : vector<8x8xf32>, vector<8x8xf32>, vector<8x8xf32> -> vector<8x8xf32>
    %474 = tpu.concatenate %134, %247, %360, %473 in 1 : vector<8x8xf32>, vector<8x8xf32>, vector<8x8xf32>, vector<8x8xf32> -> vector<8x32xf32>
    %c0_120 = arith.constant 0 : index
    %c0_121 = arith.constant 0 : index
    %475 = vector.load %arg16[%c0_120, %c0_121] : memref<32x32xf32, #tpu.memory_space<vmem>>, vector<32x32xf32>
    %cst_122 = arith.constant dense<0.000000e+00> : vector<8x32xf32>
    %476 = tpu.matmul %474, %475, %cst_122 {dimension_numbers = #tpu.dot_dimension_numbers<[1], [0], [0], [1], [0, 0, 1, 1], [], []>} : vector<8x32xf32>, vector<32x32xf32>, vector<8x32xf32> -> vector<8x32xf32>
    %c0_123 = arith.constant 0 : index
    %c0_124 = arith.constant 0 : index
    %477 = vector.load %arg17[%c0_123, %c0_124] : memref<1x32xf32, #tpu.memory_space<vmem>>, vector<1x32xf32>
    %478 = vector.broadcast %477 : vector<1x32xf32> to vector<8x32xf32>
    %479 = arith.addf %476, %478 : vector<8x32xf32>
    %c0_125 = arith.constant 0 : index
    %c0_126 = arith.constant 0 : index
    %c0_127 = arith.constant 0 : index
    %480 = vector.load %arg18[%c0_125, %c0_126, %c0_127] : memref<1x8x32xf32, #tpu.memory_space<vmem>>, vector<1x8x32xf32>
    %481 = vector.shape_cast %480 : vector<1x8x32xf32> to vector<8x32xf32>
    %482 = vector.shape_cast %479 : vector<8x32xf32> to vector<1x8x32xf32>
    tpu.vector_store %arg18[%c0_125, %c0_126, %c0_127], %482 {strides = array<i32>} : memref<1x8x32xf32, #tpu.memory_space<vmem>>, vector<1x8x32xf32>,
    return
  }
  func.func @transform_0(%arg0: i32) -> (i32, i32, i32) {
    %c0_i32 = arith.constant 0 : i32
    %c0_i32_0 = arith.constant 0 : i32
    %c0_i32_1 = arith.constant 0 : i32
    return %arg0, %c0_i32, %c0_i32_0 : i32, i32, i32
  }
  func.func @transform_1(%arg0: i32) -> (i32, i32, i32) {
    %c0_i32 = arith.constant 0 : i32
    %c0_i32_0 = arith.constant 0 : i32
    %c0_i32_1 = arith.constant 0 : i32
    return %arg0, %c0_i32, %c0_i32_0 : i32, i32, i32
  }
  func.func @transform_2(%arg0: i32) -> (i32, i32, i32) {
    %c0_i32 = arith.constant 0 : i32
    %c0_i32_0 = arith.constant 0 : i32
    %c0_i32_1 = arith.constant 0 : i32
    return %arg0, %c0_i32, %c0_i32_0 : i32, i32, i32
  }
  func.func @transform_3(%arg0: i32) -> (i32, i32) {
    %c0_i32 = arith.constant 0 : i32
    %c0_i32_0 = arith.constant 0 : i32
    %c0_i32_1 = arith.constant 0 : i32
    return %c0_i32, %c0_i32_0 : i32, i32
  }
  func.func @transform_4(%arg0: i32) -> (i32, i32) {
    %c0_i32 = arith.constant 0 : i32
    %c0_i32_0 = arith.constant 0 : i32
    %c0_i32_1 = arith.constant 0 : i32
    return %c0_i32, %c0_i32_0 : i32, i32
  }
  func.func @transform_5(%arg0: i32) -> (i32, i32) {
    %c0_i32 = arith.constant 0 : i32
    %c0_i32_0 = arith.constant 0 : i32
    %c0_i32_1 = arith.constant 0 : i32
    return %c0_i32, %c0_i32_0 : i32, i32
  }
  func.func @transform_6(%arg0: i32) -> (i32, i32) {
    %c0_i32 = arith.constant 0 : i32
    %c0_i32_0 = arith.constant 0 : i32
    %c0_i32_1 = arith.constant 0 : i32
    return %c0_i32, %c0_i32_0 : i32, i32
  }
  func.func @transform_7(%arg0: i32) -> (i32, i32) {
    %c0_i32 = arith.constant 0 : i32
    %c0_i32_0 = arith.constant 0 : i32
    %c0_i32_1 = arith.constant 0 : i32
    return %c0_i32, %c0_i32_0 : i32, i32
  }
  func.func @transform_8(%arg0: i32) -> (i32, i32) {
    %c0_i32 = arith.constant 0 : i32
    %c0_i32_0 = arith.constant 0 : i32
    %c0_i32_1 = arith.constant 0 : i32
    return %c0_i32, %c0_i32_0 : i32, i32
  }
  func.func @transform_9(%arg0: i32) -> (i32, i32) {
    %c0_i32 = arith.constant 0 : i32
    %c0_i32_0 = arith.constant 0 : i32
    %c0_i32_1 = arith.constant 0 : i32
    return %c0_i32, %c0_i32_0 : i32, i32
  }
  func.func @transform_10(%arg0: i32) -> (i32, i32) {
    %c0_i32 = arith.constant 0 : i32
    %c0_i32_0 = arith.constant 0 : i32
    %c0_i32_1 = arith.constant 0 : i32
    return %c0_i32, %c0_i32_0 : i32, i32
  }
  func.func @transform_11(%arg0: i32) -> (i32, i32) {
    %c0_i32 = arith.constant 0 : i32
    %c0_i32_0 = arith.constant 0 : i32
    %c0_i32_1 = arith.constant 0 : i32
    return %c0_i32, %c0_i32_0 : i32, i32
  }
  func.func @transform_12(%arg0: i32) -> (i32, i32) {
    %c0_i32 = arith.constant 0 : i32
    %c0_i32_0 = arith.constant 0 : i32
    %c0_i32_1 = arith.constant 0 : i32
    return %c0_i32, %c0_i32_0 : i32, i32
  }
  func.func @transform_13(%arg0: i32) -> i32 {
    %c0_i32 = arith.constant 0 : i32
    %c0_i32_0 = arith.constant 0 : i32
    return %c0_i32 : i32
  }
  func.func @transform_14(%arg0: i32) -> i32 {
    %c0_i32 = arith.constant 0 : i32
    %c0_i32_0 = arith.constant 0 : i32
    return %c0_i32 : i32
  }
  func.func @transform_15(%arg0: i32) -> (i32, i32) {
    %c0_i32 = arith.constant 0 : i32
    %c0_i32_0 = arith.constant 0 : i32
    %c0_i32_1 = arith.constant 0 : i32
    return %c0_i32, %c0_i32_0 : i32, i32
  }
  func.func @transform_16(%arg0: i32) -> (i32, i32) {
    %c0_i32 = arith.constant 0 : i32
    %c0_i32_0 = arith.constant 0 : i32
    %c0_i32_1 = arith.constant 0 : i32
    return %c0_i32, %c0_i32_0 : i32, i32
  }
  func.func @transform_17(%arg0: i32) -> (i32, i32, i32) {
    %c0_i32 = arith.constant 0 : i32
    %c0_i32_0 = arith.constant 0 : i32
    %c0_i32_1 = arith.constant 0 : i32
    return %arg0, %c0_i32, %c0_i32_0 : i32, i32, i32
  }
  func.func @transform_18(%arg0: i32) -> (i32, i32, i32, i32) {
    %c0_i32 = arith.constant 0 : i32
    %c0_i32_0 = arith.constant 0 : i32
    %c0_i32_1 = arith.constant 0 : i32
    %c0_i32_2 = arith.constant 0 : i32
    return %arg0, %c0_i32, %c0_i32_0, %c0_i32_1 : i32, i32, i32, i32
  }
}

</mosaic_0001>

<bundles_post_ra>
// kernel: attention_layer.1
= control target key start
LH: loop header
LB: loop body
LE: loop exit
PB: predicated region body
PF: predicated region fallthrough
CT: control target
= control target key end

     0   :  { %s4890_s0 = inlined_call_operand.hbm [shape: f32[2,8,32], index: 0, kind: input, shape index: {}]   ;;  %s4891_s1 = inlined_call_operand.hbm [shape: f32[2,8,32], index: 1, kind: input, shape index: {}]   ;;  %s4892_s2 = inlined_call_operand.hbm [shape: f32[2,8,32], index: 2, kind: input, shape index: {}]   ;;  %s4893_s3 = inlined_call_operand.hbm [shape: f32[32,32], index: 3, kind: input, shape index: {}]   ;;  %s4894_s4 = inlined_call_operand.vmem [shape: f32[1,32], index: 4, kind: input, shape index: {}]   ;;  %s4895_s5 = inlined_call_operand.hbm [shape: f32[32,32], index: 5, kind: input, shape index: {}]   ;;  %s4896_s6 = inlined_call_operand.hbm [shape: f32[1,32], index: 6, kind: input, shape index: {}]   ;;  %s4897_s7 = inlined_call_operand.hbm [shape: f32[32,32], index: 7, kind: input, shape index: {}]   ;;  %s4898_s8 = inlined_call_operand.hbm [shape: f32[1,32], index: 8, kind: input, shape index: {}]   ;;  %s4899_s9 = inlined_call_operand.vmem [shape: f32[8,8], index: 9, kind: input, shape index: {}]   ;;  %s4900_s10 = inlined_call_operand.hbm [shape: f32[1,8], index: 10, kind: input, shape index: {}]   ;;  %s4901_s11 = inlined_call_operand.vmem [shape: f32[8,8], index: 11, kind: input, shape index: {}]   ;;  %s4902_s12 = inlined_call_operand.vmem [shape: f32[1,8], index: 12, kind: input, shape index: {}]   ;;  %s4903_s13 = inlined_call_operand.vmem [shape: f32[8], index: 13, kind: input, shape index: {}]   ;;  %s4904_s14 = inlined_call_operand.<no memory space> [shape: f32[1], index: 14, kind: input, shape index: {}]   ;;  %s4905_s15 = inlined_call_operand.vmem [shape: f32[32,32], index: 15, kind: input, shape index: {}]   ;;  %s4906_s16 = inlined_call_operand.hbm [shape: f32[1,32], index: 16, kind: input, shape index: {}]   ;;  %s4907_s17 = inlined_call_operand.hbm [shape: f32[2,8,32], index: 17, kind: output, shape index: {0}]   ;;  %s4908_s18 = inlined_call_operand.hbm [shape: f32[2,4,8,8], index: 18, kind: output, shape index: {1}]  }
   0x1   :  { %4940 = sst [smem:[#allocation40_spill]] %s4890_s0 }
   0x2   :  { %4941 = sst [smem:[#allocation41_spill]] %s4891_s1 }
   0x3   :  { %4942 = sst [smem:[#allocation42_spill]] %s4892_s2 }
   0x4   :  { %4943 = sst [smem:[#allocation43_spill]] %s4893_s3 }
   0x5   :  { %4944 = sst [smem:[#allocation44_spill]] %s4894_s4 }
   0x6   :  { %4945 = sst [smem:[#allocation45_spill]] %s4895_s5 }
   0x7   :  { %4946 = sst [smem:[#allocation46_spill]] %s4896_s6 }
   0x8   :  { %4947 = sst [smem:[#allocation47_spill]] %s4898_s8 }
   0x9   :  { %4948 = sst [smem:[#allocation48_spill]] %s4899_s9 }
   0xa   :  { %4949 = sst [smem:[#allocation49_spill]] %s4901_s11 }
   0xb   :  { %4950 = sst [smem:[#allocation50_spill]] %s4902_s12 }
   0xc   :  { %4951 = sst [smem:[#allocation51_spill]] %s4905_s15 }
   0xd   :  { %4952 = sst [smem:[#allocation52_spill]] %s4907_s17 }
   0xe   :  { %4953 = sst [smem:[#allocation53_spill]] %s4908_s18 }
   0xf   :  { %24 = sst [smem:[#allocation2]] %s4904_s14 }
  0x10   :  { %25 = vsyncpa [#allocation4], 0 }
  0x11   :  { %27 = vsyncpa [#allocation4 + $0x1], 0 }
  0x12   :  { %28 = vsyncpa [#allocation8], 0 }
  0x13   :  { %30 = vsyncpa [#allocation8 + $0x1], 0 }
  0x14   :  { %31 = vsyncpa [#allocation11], 0 }
  0x15   :  { %32 = vsyncpa [#allocation14], 0 }
  0x16   :  { %33 = vsyncpa [#allocation17], 0 }
  0x17   :  { %34 = vsyncpa [#allocation6], 0 }
  0x18   :  { %35 = vsyncpa [#allocation21], 0 }
  0x19   :  { %36 = vsyncpa [#allocation5], 0 }
  0x1a   :  { %38 = vsyncpa [#allocation5 + $0x1], 0 }
  0x1b   :  { %39 = vsyncpa [#allocation24], 0 }
  0x1c   :  { %41 = vsyncpa [#allocation24 + $0x1], 0  ;;  %s4101_s29 = smov 0   ;;  %s4103_s30 = smov 0  }
  0x1d   :  { %s4105_s0 = smov 0   ;;  %s4107_s14 = smov 0  }
  0x1e LB: > { %4954 = sst [smem:[#allocation34_spill]] %s3956_s29  ;;  %s3970_s19 = smov [#allocation10]   ;;  %s3968_s14 = sphi %s4107_s14, %s5009_s14   ;;  %s3964_s0 = sphi %s4105_s0, %s5013_s0   ;;  %s3960_s30 = sphi %s4103_s30, %s5012_s30   ;;  %s3956_s29 = sphi %s4101_s29, %s5011_s29  }
  0x1f   : > { %4955 = sst [smem:[#allocation35_spill]] %s3968_s14  ;;  %s488_s1 = sshll.u32 %s3970_s19, 4  ;;  %s4127_s1 = int_to_ptr.vmem [resolvable:$true] %s488_s1 }
  0x20   : > { %s4122_s20 = sadd.s32 4294967295, %s3968_s14   ;;  %p3002_p0 = scmp.ge.s32.totalorder %s3968_s14, 1 }
  0x21   : > { %p4924_p1 = scmp.eq.s32.totalorder %s4122_s20, 0  ;;  %p476_p2 = scmp.lt.s32.totalorder %s3968_s14, 3 }
  0x22   : > { %s3971_s22 = smov [#allocation13]   ;;  %s3972_s24 = smov [#allocation16]  }
  0x23   : > { %p4129_p3 = pnand %p3002_p0, %p476_p2  ;;  %s518_s2 = sshll.u32 %s3971_s22, 4  ;;  %s4142_s2 = int_to_ptr.vmem [resolvable:$true] %s518_s2 }
  0x24   : > { %s542_s25 = sshll.u32 %s3972_s24, 4  ;;  %s4958_s3 = sld [smem:[#allocation43_spill]]  ;;  %s4144_s25 = int_to_ptr.vmem [resolvable:$true] %s542_s25 }
  0x25   : > { %s4956_s21 = scalar_select %p4129_p3, 1, 0 }
  0x26   : > { %p3313_p5 = pneg %p4129_p3 }
  0x28   : > { %p4138_p6 = pnand %p3313_p5, %p4924_p1 }
  0x2a   : > { %s4957_s23 = scalar_select %p4138_p6, 1, 0 }
  0x2b   : > { %s3545_s28 = scalar_lea.hbm %s4958_s3, 512  ;;  %p4154_p8 = pneg %p4138_p6 }
  0x2c   : > { %p3546_p7 = scmp.ne.s32.totalorder %s4958_s3, %s3545_s28  ;;  %p3552_p11 = scmp.lt.u32.totalorder %s3545_s28, %s4958_s3 }
  0x2d   : > { %s4959_s22 = scalar_select %p4154_p8, 1, 0 }
  0x2e   : > { %p3548_p9 = pnand %p4154_p8, %p3546_p7 }
  0x30   : > { %p3549_p10 = pneg %p3548_p9 }
  0x32   : > { %p3554_p12 = pnand %p3552_p11, %p3549_p10 }
  0x34   : > { %3557 = shalt.err (!%p3554_p12)
}
  0x35   : > { %s3558_s17 = scalar_lea.vmem %s4127_s1, 512  ;;  %p3566_p5 = scmp.lt.s32.totalorder %s4127_s1, %s4127_s1 }
  0x36   : > { %p3559_p13 = scmp.ne.s32.totalorder %s4127_s1, %s3558_s17  ;;  %p3567_p4 = scmp.lt.s32.totalorder %s3558_s17, %s3558_s17 }
  0x38   : > { %p3561_p0 = pnand %p3559_p13, %p4154_p8  ;;  %p3568_p7 = por %p3567_p4, %p3566_p5 }
  0x3a   : > { %p3562_p2 = pneg %p3561_p0 }
  0x3c   : > { %p3569_p9 = pnand %p3568_p7, %p3562_p2 }
  0x3e   : > { %3572 = shalt.err (!%p3569_p9)
}
  0x3f   : > { %s4916_s26 = smov 128   ;;  %s4918_s18 = smov 8  }
  0x40   : > { %3316 = dma.hbm_to_vmem [thread:$0]  (!%p4138_p6), %s4958_s3, 512, %s4127_s1, [#allocation11], %s4916_s26, %s4916_s26, %s4918_s18  }
  0x41   : > { %s4960_s6 = sld [smem:[#allocation46_spill]] }
  0x47   : > { %s3573_s17 = scalar_lea.hbm %s4960_s6, 16 }
  0x48   : > { %p3574_p4 = scmp.ne.s32.totalorder %s4960_s6, %s3573_s17  ;;  %p3580_p12 = scmp.lt.u32.totalorder %s3573_s17, %s4960_s6 }
  0x4a   : > { %p3576_p10 = pnand %p3574_p4, %p4154_p8 }
  0x4c   : > { %p3577_p11 = pneg %p3576_p10 }
  0x4e   : > { %p3582_p13 = pnand %p3580_p12, %p3577_p11 }
  0x50   : > { %3585 = shalt.err (!%p3582_p13)
}
  0x51   : > { %s3586_s1 = scalar_lea.vmem %s4142_s2, 16  ;;  %s3593_s12 = scalar_lea.vmem %s4142_s2, 32 }
  0x52   : > { %p3587_p0 = scmp.ne.s32.totalorder %s4142_s2, %s3586_s1  ;;  %p3594_p7 = scmp.lt.s32.totalorder %s4142_s2, %s4142_s2 }
  0x53   : > { %p3595_p9 = scmp.lt.s32.totalorder %s3593_s12, %s3586_s1 }
  0x54   : > { %p3589_p2 = pnand %p3587_p0, %p4154_p8 }
  0x55   : > { %p3596_p4 = por %p3595_p9, %p3594_p7 }
  0x56   : > { %p3590_p5 = pneg %p3589_p2 }
  0x58   : > { %p3597_p10 = pnand %p3596_p4, %p3590_p5 }
  0x5a   : > { %3600 = shalt.err (!%p3597_p10)
}
  0x5b   : > { %3322 = dma.hbm_to_vmem [thread:$0]  (!%p4138_p6), %s4960_s6, 16, %s4142_s2, [#allocation14]  }
  0x5c   : > { %s4961_s8 = sld [smem:[#allocation47_spill]] }
  0x62   : > { %s3601_s28 = scalar_lea.hbm %s4961_s8, 16 }
  0x63   : > { %p3602_p11 = scmp.ne.s32.totalorder %s4961_s8, %s3601_s28  ;;  %p3608_p0 = scmp.lt.u32.totalorder %s3601_s28, %s4961_s8 }
  0x65   : > { %p3604_p12 = pnand %p3602_p11, %p4154_p8 }
  0x67   : > { %p3605_p13 = pneg %p3604_p12 }
  0x69   : > { %p3610_p2 = pnand %p3608_p0, %p3605_p13 }
  0x6b   : > { %3613 = shalt.err (!%p3610_p2)
}
  0x6c   : > { %s3614_s2 = scalar_lea.vmem %s4144_s25, 16  ;;  %s3621_s12 = scalar_lea.vmem %s4144_s25, 32 }
  0x6d   : > { %p3615_p5 = scmp.ne.s32.totalorder %s4144_s25, %s3614_s2  ;;  %p3622_p4 = scmp.lt.s32.totalorder %s4144_s25, %s4144_s25 }
  0x6e   : > { %p3623_p10 = scmp.lt.s32.totalorder %s3621_s12, %s3614_s2 }
  0x6f   : > { %p3617_p7 = pnand %p3615_p5, %p4154_p8 }
  0x70   : > { %p3624_p11 = por %p3623_p10, %p3622_p4 }
  0x71   : > { %p3618_p9 = pneg %p3617_p7 }
  0x73   : > { %p3625_p12 = pnand %p3624_p11, %p3618_p9 }
  0x75   : > { %3628 = shalt.err (!%p3625_p12)
}
  0x76   : > { %3328 = dma.hbm_to_vmem [thread:$0]  (!%p4138_p6), %s4961_s8, 16, %s4144_s25, [#allocation17]  }
  0x77   : > { %s3001_s15 = sadd.s32 4294967294, %s3968_s14   ;;  %s4228_s27 = sadd.s32 1, %s3968_s14  }
  0x78   : > { %4962 = sst [smem:[#allocation36_spill]] %s4228_s27  ;;  %s54_s28 = sadd.s32 1, %s3964_s0 }
  0x79   : > { %s51_s19 = ssub.s32 %s3968_s14, %s4228_s27  ;;  %p61_p13 = scmp.ne.s32.totalorder %s3964_s0, %s3960_s30 }
  0x7a   : > { %p52_p0 = scmp.eq.s32.totalorder %s51_s19, 0  ;;  %p62_p2 = scmp.eq.s32.totalorder %s3968_s14, 0 }
  0x7b   : > { %p67_p5 = scmp.ne.s32.totalorder %s3960_s30, %s3956_s29  ;;  %p437_p7 = scmp.eq.s32.totalorder %s4122_s20, 1 }
  0x7c   : > { %s4240_s24 = scalar_select %p52_p0, %s3964_s0, %s54_s28  }
  0x7d   : > { %p63_p9 = por %p62_p2, %p61_p13  ;;  %p4244_p4 = por %p4924_p1, %p67_p5 }
  0x7e   : > { %4963 = sst [smem:[#allocation37_spill]] %s4240_s24  ;;  %p4248_p10 = por %p437_p7, %p61_p13 }
  0x7f   : > { %s4964_s25 = scalar_select %p4244_p4, 1, 0 }
  0x80   : > { %s4965_s17 = scalar_select %p4248_p10, 1, 0 }
  0x81   : > { %p443_p11 = scmp.eq.s32.totalorder %s3001_s15, 1  ;;  %p3363_p12 = scmp.lt.s32.totalorder %s3968_s14, 2 }
  0x82   : > { %4966 = sst [smem:[#allocation38_spill]] %s4965_s17  ;;  %s4920_s1 = sand.u32 1, %s3964_s0  }
  0x83   : > { %p4254_p3 = por %p443_p11, %p67_p5  ;;  %s4260_s12 = sshll.u32 %s4920_s1, 3 }
  0x84   : > { %s4263_s4 = sshll.u32 %s3968_s14, 7  ;;  %p4265_p0 = pnand %p3363_p12, %p63_p9 }
  0x85   : > { %s4967_s2 = scalar_select %p4254_p3, 1, 0 }
  0x86   : > { %s4969_s11 = scalar_select %p4265_p0, 1, 0 }
  0x87   : > { %4968 = sst [smem:[#allocation39_spill]] %s4967_s2  ;;  %s619_s28 = sand.u32 1, %s3968_s14  }
  0x88   : > { %s4970_s26 = sld [smem:[#allocation41_spill]]  ;;  %s623_s1 = scalar_lea.vmem [#allocation7], %s4260_s12 }
  0x89   : > { %s630_s3 = sshll.u32 %s623_s1, 4  ;;  %s4279_s6 = scalar_lea.sflag [#allocation8], %s619_s28  ;;  %s4277_s3 = int_to_ptr.vmem [resolvable:$true] %s630_s3 }
  0x8a   : > { %p4285_p2 = pneg %p4265_p0 }
  0x8c   : > { %s4971_s24 = scalar_select %p4285_p2, 1, 0 }
  0x8e   : > { %s4274_s18 = scalar_lea.hbm %s4970_s26, %s4263_s4  ;;  %s3634_s27 = scalar_lea.hbm %s4970_s26, 256 }
  0x8f   : > { %s3629_s8 = scalar_lea.hbm %s4274_s18, 128  ;;  %p3635_p9 = scmp.lt.u32.totalorder %s4274_s18, %s4970_s26 }
  0x90   : > { %p3630_p13 = scmp.ne.s32.totalorder %s4274_s18, %s3629_s8  ;;  %p3636_p11 = scmp.lt.u32.totalorder %s3634_s27, %s3629_s8 }
  0x91   : > { %p3638_p1 = scmp.lt.u32.totalorder %s3629_s8, %s4274_s18 }
  0x92   : > { %p3632_p5 = pnand %p4285_p2, %p3630_p13  ;;  %p3637_p12 = por %p3636_p11, %p3635_p9 }
  0x94   : > { %p3633_p7 = pneg %p3632_p5  ;;  %p3639_p3 = por %p3638_p1, %p3637_p12 }
  0x96   : > { %p3640_p10 = pnand %p3639_p3, %p3633_p7 }
  0x98   : > { %3643 = shalt.err (!%p3640_p10)
}
  0x99   : > { %s3644_s28 = scalar_lea.vmem %s4277_s3, 128  ;;  %s3975_s15 = smov [#allocation7]  }
  0x9a   : > { %p3645_p13 = scmp.ne.s32.totalorder %s4277_s3, %s3644_s28  ;;  %s3649_s19 = sshll.u32 %s3975_s15, 4  ;;  %s3650_s19 = int_to_ptr.vmem [resolvable:$false] %s3649_s19 }
  0x9b   : > { %s3651_s14 = scalar_lea.vmem %s3650_s19, 256  ;;  %p3652_p6 = scmp.lt.s32.totalorder %s4277_s3, %s3650_s19 }
  0x9c   : > { %p3647_p5 = pnand %p3645_p13, %p4285_p2  ;;  %p3653_p8 = scmp.lt.s32.totalorder %s3651_s14, %s3644_s28 }
  0x9e   : > { %p3648_p4 = pneg %p3647_p5  ;;  %p3654_p9 = por %p3653_p8, %p3652_p6 }
  0xa0   : > { %p3655_p11 = pnand %p3654_p9, %p3648_p4 }
  0xa2   : > { %3658 = shalt.err (!%p3655_p11)
}
  0xa3   : > { %3344 = dma.hbm_to_vmem [thread:$0]  (!%p4265_p0), %s4274_s18, 128, %s4277_s3, %s4279_s6  }
  0xa4   : > { %s3976_s8 = smov [#allocation12]   ;;  %s3977_s1 = smov [#allocation15]  }
  0xa5   : > { %s504_s27 = sshll.u32 %s3976_s8, 4  ;;  %s528_s26 = sshll.u32 %s3977_s1, 4  ;;  %s505_s27 = int_to_ptr.vmem [resolvable:$true] %s504_s27  ;;  %s529_s26 = int_to_ptr.vmem [resolvable:$true] %s528_s26 }
  0xa6   : > { %s4972_s5 = sld [smem:[#allocation45_spill]]  ;;  %p4973_p3 = scmp.ne.s32.totalorder %s4959_s22, 0 }
  0xac   : > { %s3659_s19 = scalar_lea.hbm %s4972_s5, 512 }
  0xad   : > { %p3660_p1 = scmp.ne.s32.totalorder %s4972_s5, %s3659_s19  ;;  %p3666_p4 = scmp.lt.u32.totalorder %s3659_s19, %s4972_s5 }
  0xaf   : > { %p3662_p6 = pnand %p3660_p1, %p4973_p3 }
  0xb1   : > { %p3663_p8 = pneg %p3662_p6 }
  0xb3   : > { %p3668_p10 = pnand %p3666_p4, %p3663_p8 }
  0xb5   : > { %3671 = shalt.err (!%p3668_p10)
}
  0xb6   : > { %s3672_s3 = scalar_lea.vmem %s505_s27, 512  ;;  %p3680_p5 = scmp.lt.s32.totalorder %s505_s27, %s505_s27 }
  0xb7   : > { %p3673_p7 = scmp.ne.s32.totalorder %s505_s27, %s3672_s3  ;;  %p3681_p9 = scmp.lt.s32.totalorder %s3672_s3, %s3672_s3 }
  0xb9   : > { %p3675_p12 = pnand %p3673_p7, %p4973_p3  ;;  %p3682_p11 = por %p3681_p9, %p3680_p5 }
  0xbb   : > { %p3676_p13 = pneg %p3675_p12 }
  0xbd   : > { %p3683_p0 = pnand %p3682_p11, %p3676_p13 }
  0xbf   : > { %3686 = shalt.err (!%p3683_p0)
}
  0xc0   : > { %p4974_p1 = scmp.ne.s32.totalorder %s4957_s23, 0  ;;  %s4975_s18 = smov 8  }
  0xc1   : > { %s4976_s2 = smov 128   ;;  %s3687_s15 = scalar_lea.hbm %s4897_s7, 512 }
  0xc2   : > { %3319 = dma.hbm_to_vmem [thread:$0]  (!%p4974_p1), %s4972_s5, 512, %s505_s27, [#allocation11], %s4976_s2, %s4976_s2, %s4975_s18  }
  0xc3   : > { %p3688_p6 = scmp.ne.s32.totalorder %s4897_s7, %s3687_s15  ;;  %p3694_p4 = scmp.lt.u32.totalorder %s3687_s15, %s4897_s7 }
  0xc5   : > { %p3690_p0 = pnand %p3688_p6, %p4973_p3 }
  0xc7   : > { %p3691_p8 = pneg %p3690_p0 }
  0xc9   : > { %p3696_p10 = pnand %p3694_p4, %p3691_p8 }
  0xcb   : > { %3699 = shalt.err (!%p3696_p10)
}
  0xcc   : > { %s3700_s29 = scalar_lea.vmem %s529_s26, 512  ;;  %p3708_p5 = scmp.lt.s32.totalorder %s529_s26, %s529_s26 }
  0xcd   : > { %p3701_p7 = scmp.ne.s32.totalorder %s529_s26, %s3700_s29  ;;  %p3709_p9 = scmp.lt.s32.totalorder %s3700_s29, %s3700_s29 }
  0xcf   : > { %p3703_p12 = pnand %p3701_p7, %p4973_p3  ;;  %p3710_p11 = por %p3709_p9, %p3708_p5 }
  0xd1   : > { %p3704_p13 = pneg %p3703_p12 }
  0xd3   : > { %p3711_p2 = pnand %p3710_p11, %p3704_p13 }
  0xd5   : > { %3714 = shalt.err (!%p3711_p2)
}
  0xd6   : > { %3325 = dma.hbm_to_vmem [thread:$0]  (!%p4974_p1), %s4897_s7, 512, %s529_s26, [#allocation14], %s4976_s2, %s4976_s2, %s4975_s18  }
  0xd7   : > { %s3978_s8 = smov [#allocation18]   ;;  %s573_s28 = sshll.u32 %s4903_s13, 4  ;;  %s4354_s28 = int_to_ptr.vmem [resolvable:$true] %s573_s28 }
  0xd8   : > { %s556_s1 = sshll.u32 %s3978_s8, 4  ;;  %s3715_s29 = scalar_lea.hbm %s4900_s10, 16  ;;  %s557_s1 = int_to_ptr.vmem [resolvable:$true] %s556_s1 }
  0xd9   : > { %p3716_p2 = scmp.ne.s32.totalorder %s4900_s10, %s3715_s29  ;;  %p3722_p8 = scmp.lt.u32.totalorder %s3715_s29, %s4900_s10 }
  0xdb   : > { %p3718_p6 = pnand %p3716_p2, %p4973_p3 }
  0xdd   : > { %p3719_p0 = pneg %p3718_p6 }
  0xdf   : > { %p3724_p4 = pnand %p3722_p8, %p3719_p0 }
  0xe1   : > { %3727 = shalt.err (!%p3724_p4)
}
  0xe2   : > { %s3728_s2 = scalar_lea.vmem %s557_s1, 16  ;;  %s3735_s27 = scalar_lea.vmem %s557_s1, 32 }
  0xe3   : > { %p3729_p10 = scmp.ne.s32.totalorder %s557_s1, %s3728_s2  ;;  %p3736_p13 = scmp.lt.s32.totalorder %s557_s1, %s557_s1 }
  0xe4   : > { %p3737_p5 = scmp.lt.s32.totalorder %s3735_s27, %s3728_s2 }
  0xe5   : > { %p3731_p7 = pnand %p3729_p10, %p4973_p3 }
  0xe6   : > { %p3738_p9 = por %p3737_p5, %p3736_p13 }
  0xe7   : > { %p3732_p12 = pneg %p3731_p7 }
  0xe9   : > { %p3739_p11 = pnand %p3738_p9, %p3732_p12 }
  0xeb   : > { %3742 = shalt.err (!%p3739_p11)
}
  0xec   : > { %3331 = dma.hbm_to_vmem [thread:$0]  (!%p4974_p1), %s4900_s10, 16, %s557_s1, [#allocation17]  }
  0xed   : > { %s3743_s17 = scalar_lea.vmem %s4354_s28, 16  ;;  %p3751_p8 = scmp.lt.s32.totalorder %s4354_s28, %s4354_s28 }
  0xee   : > { %p3744_p2 = scmp.ne.s32.totalorder %s4354_s28, %s3743_s17  ;;  %p3752_p4 = scmp.lt.s32.totalorder %s3743_s17, %s3743_s17 }
  0xf0   : > { %p3746_p6 = pnand %p3744_p2, %p4973_p3  ;;  %p3753_p10 = por %p3752_p4, %p3751_p8 }
  0xf2   : > { %p3747_p0 = pneg %p3746_p6 }
  0xf4   : > { %p3754_p7 = pnand %p3753_p10, %p3747_p0 }
  0xf6   : > { %3757 = shalt.err (!%p3754_p7)
}
  0xf7   : > { %s3979_s8 = smov [#allocation19]   ;;  %s3980_s15 = smov [#allocation20]  }
  0xf8   : > { %3334 = dma.vmem_to_smem (!%p4974_p1), %s4354_s28, 16, %s3979_s8, [#allocation6]  }
  0xf9   : > { %s590_s19 = sshll.u32 %s3980_s15, 4  ;;  %s3758_s3 = scalar_lea.hbm %s4906_s16, 16  ;;  %s591_s19 = int_to_ptr.vmem [resolvable:$true] %s590_s19 }
  0xfa   : > { %p3759_p12 = scmp.ne.s32.totalorder %s4906_s16, %s3758_s3  ;;  %p3765_p9 = scmp.lt.u32.totalorder %s3758_s3, %s4906_s16 }
  0xfc   : > { %p3761_p13 = pnand %p3759_p12, %p4973_p3 }
  0xfe   : > { %p3762_p5 = pneg %p3761_p13 }
 0x100   : > { %p3767_p11 = pnand %p3765_p9, %p3762_p5 }
 0x102   : > { %3770 = shalt.err (!%p3767_p11)
}
 0x103   : > { %s3771_s28 = scalar_lea.vmem %s591_s19, 16  ;;  %s3778_s27 = scalar_lea.vmem %s591_s19, 32 }
 0x104   : > { %p3772_p2 = scmp.ne.s32.totalorder %s591_s19, %s3771_s28  ;;  %p3779_p8 = scmp.lt.s32.totalorder %s591_s19, %s591_s19 }
 0x105   : > { %p3780_p4 = scmp.lt.s32.totalorder %s3778_s27, %s3771_s28 }
 0x106   : > { %p3774_p6 = pnand %p3772_p2, %p4973_p3 }
 0x107   : > { %p3781_p10 = por %p3780_p4, %p3779_p8 }
 0x108   : > { %p3775_p0 = pneg %p3774_p6 }
 0x10a   : > { %p3782_p7 = pnand %p3781_p10, %p3775_p0 }
 0x10c   : > { %3785 = shalt.err (!%p3782_p7)
}
 0x10d   : > { %3337 = dma.hbm_to_vmem [thread:$0]  (!%p4974_p1), %s4906_s16, 16, %s591_s19, [#allocation21]  }
 0x10e   : > { %s4977_s8 = sld [smem:[#allocation40_spill]]  ;;  %s605_s1 = scalar_lea.vmem [#allocation3], %s4260_s12 }
 0x10f   : > { %s612_s14 = sshll.u32 %s605_s1, 4  ;;  %s4978_s23 = sand.u32 1, %s3964_s0   ;;  %s613_s14 = int_to_ptr.vmem [resolvable:$true] %s612_s14 }
 0x110   : > { %s602_s3 = scalar_lea.sflag [#allocation4], %s4978_s23  ;;  %p4979_p12 = scmp.ne.s32.totalorder %s4971_s24, 0 }
 0x114   : > { %s4405_s15 = scalar_lea.hbm %s4977_s8, %s4263_s4  ;;  %s3791_s18 = scalar_lea.hbm %s4977_s8, 256 }
 0x115   : > { %s3786_s29 = scalar_lea.hbm %s4405_s15, 128  ;;  %p3792_p1 = scmp.lt.u32.totalorder %s4405_s15, %s4977_s8 }
 0x116   : > { %p3787_p3 = scmp.ne.s32.totalorder %s4405_s15, %s3786_s29  ;;  %p3793_p9 = scmp.lt.u32.totalorder %s3791_s18, %s3786_s29 }
 0x117   : > { %p3795_p2 = scmp.lt.u32.totalorder %s3786_s29, %s4405_s15 }
 0x118   : > { %p3789_p13 = pnand %p3787_p3, %p4979_p12  ;;  %p3794_p11 = por %p3793_p9, %p3792_p1 }
 0x11a   : > { %p3790_p5 = pneg %p3789_p13  ;;  %p3796_p6 = por %p3795_p2, %p3794_p11 }
 0x11c   : > { %p3797_p0 = pnand %p3796_p6, %p3790_p5 }
 0x11e   : > { %3800 = shalt.err (!%p3797_p0)
}
 0x11f   : > { %s3801_s27 = scalar_lea.vmem %s613_s14, 128  ;;  %s3981_s5 = smov [#allocation3]  }
 0x120   : > { %p3802_p8 = scmp.ne.s32.totalorder %s613_s14, %s3801_s27  ;;  %s3806_s9 = sshll.u32 %s3981_s5, 4  ;;  %s3807_s9 = int_to_ptr.vmem [resolvable:$false] %s3806_s9 }
 0x121   : > { %s3808_s17 = scalar_lea.vmem %s3807_s9, 256  ;;  %p3809_p7 = scmp.lt.s32.totalorder %s613_s14, %s3807_s9 }
 0x122   : > { %p3804_p4 = pnand %p3802_p8, %p4979_p12  ;;  %p3810_p3 = scmp.lt.s32.totalorder %s3808_s17, %s3801_s27 }
 0x124   : > { %p3805_p10 = pneg %p3804_p4  ;;  %p3811_p13 = por %p3810_p3, %p3809_p7 }
 0x126   : > { %p3812_p1 = pnand %p3811_p13, %p3805_p10 }
 0x128   : > { %3815 = shalt.err (!%p3812_p1)
}
 0x129   : > { %p4980_p9 = scmp.ne.s32.totalorder %s4969_s11, 0  ;;  %s4981_s23 = sld [smem:[#allocation42_spill]] }
 0x12a   : > { %s641_s19 = scalar_lea.vmem [#allocation9], %s4260_s12 }
 0x12b   : > { %3341 = dma.hbm_to_vmem [thread:$0]  (!%p4980_p9), %s4405_s15, 128, %s613_s14, %s602_s3  }
 0x12c   : > { %s648_s26 = sshll.u32 %s641_s19, 4  ;;  %s649_s26 = int_to_ptr.vmem [resolvable:$true] %s648_s26 }
 0x12f   : > { %s4431_s29 = scalar_lea.hbm %s4981_s23, %s4263_s4  ;;  %s3821_s15 = scalar_lea.hbm %s4981_s23, 256 }
 0x130   : > { %s3816_s18 = scalar_lea.hbm %s4431_s29, 128  ;;  %p3822_p6 = scmp.lt.u32.totalorder %s4431_s29, %s4981_s23 }
 0x131   : > { %p3817_p5 = scmp.ne.s32.totalorder %s4431_s29, %s3816_s18  ;;  %p3823_p0 = scmp.lt.u32.totalorder %s3821_s15, %s3816_s18 }
 0x132   : > { %p3825_p4 = scmp.lt.u32.totalorder %s3816_s18, %s4431_s29 }
 0x133   : > { %p3819_p11 = pnand %p3817_p5, %p4979_p12  ;;  %p3824_p8 = por %p3823_p0, %p3822_p6 }
 0x135   : > { %p3820_p2 = pneg %p3819_p11  ;;  %p3826_p10 = por %p3825_p4, %p3824_p8 }
 0x137   : > { %p3827_p7 = pnand %p3826_p10, %p3820_p2 }
 0x139   : > { %3830 = shalt.err (!%p3827_p7)
}
 0x13a   : > { %s3831_s12 = scalar_lea.vmem %s649_s26, 128  ;;  %s3982_s4 = smov [#allocation9]  }
 0x13b   : > { %p3832_p3 = scmp.ne.s32.totalorder %s649_s26, %s3831_s12  ;;  %s3836_s27 = sshll.u32 %s3982_s4, 4  ;;  %s3837_s27 = int_to_ptr.vmem [resolvable:$false] %s3836_s27 }
 0x13c   : > { %s3838_s5 = scalar_lea.vmem %s3837_s27, 256  ;;  %p3839_p5 = scmp.lt.s32.totalorder %s649_s26, %s3837_s27 }
 0x13d   : > { %p3834_p13 = pnand %p3832_p3, %p4979_p12  ;;  %p3840_p11 = scmp.lt.s32.totalorder %s3838_s5, %s3831_s12 }
 0x13f   : > { %p3835_p1 = pneg %p3834_p13  ;;  %p3841_p9 = por %p3840_p11, %p3839_p5 }
 0x141   : > { %p3842_p0 = pnand %p3841_p9, %p3835_p1 }
 0x143   : > { %3845 = shalt.err (!%p3842_p0)
}
 0x144   : > { %p4982_p6 = scmp.ne.s32.totalorder %s4969_s11, 0  ;;  %p4983_p2 = scmp.ne.s32.totalorder %s4956_s21, 0 }
 0x145   : > { %s4455_s24 = sand.u32 (!%p4983_p2), 1, %s3960_s30   ;;  %p4984_p12 = scmp.ne.s32.totalorder (!%p4983_p2), %s4964_s25, 0 }
 0x146   : > { %3347 = dma.hbm_to_vmem [thread:$0]  (!%p4982_p6), %s4431_s29, 128, %s649_s26, %s4279_s6  }
 0x147   : > { %657 = sbr.rel (%p4983_p2) target bundleno = 4044 (0xfcc), region = 88  ;;  %s4458_s9 = sshll.u32 (!%p4983_p2), %s4455_s24, 3 }
 0x148   : > { %s660_s17 = scalar_lea.sflag (!%p4983_p2), [#allocation4], %s4455_s24  ;;  %s663_s22 = scalar_lea.vmem (!%p4983_p2), [#allocation3], %s4458_s9 }
 0x14e   : > { %3919 = dma.done.wait (%p4984_p12), %s660_s17, 128  }
 0x14f   : > { %3921 = vsyncadd (%p4984_p12), %s660_s17, 4294967168  ;;  %s668_s6 = sand.u32 1, %s4122_s20   ;;  %s672_s11 = scalar_lea.vmem [#allocation7], %s4458_s9 }
 0x150   : > { %s669_s21 = scalar_lea.sflag [#allocation8], %s668_s6 }
 0x151   : > { %3923 = dma.done.wait (%p4984_p12), %s669_s21, 256  }
 0x152   : > { %3925 = vsyncadd (%p4984_p12), %s669_s21, 4294967040  ;;  %s681_s1 = scalar_lea.vmem [#allocation9], %s4458_s9  ;;  %p4985_p9 = scmp.eq.s32.totalorder %s4122_s20, 0 }
 0x154   : > { %3927 = dma.done.wait (%p4985_p9), [#allocation11], 1024   ;;  %p4986_p8 = pmov %p4985_p9 }
 0x156   : > { %3929 = vsyncadd (%p4986_p8), [#allocation11], 4294966272  ;;  %p4987_p4 = pmov %p4986_p8 }
 0x158   : > { %3931 = dma.done.wait (%p4987_p4), [#allocation14], 528   ;;  %p4988_p10 = pmov %p4987_p4 }
 0x159   : > { %p4989_p7 = pmov %p4987_p4 }
 0x15a   : > { %3933 = vsyncadd (%p4988_p10), [#allocation14], 4294966768 }
 0x15b   : > { %3935 = dma.done.wait (%p4989_p7), [#allocation17], 32   ;;  %p4990_p3 = pmov %p4987_p4 }
 0x15d   : > { %3937 = vsyncadd (%p4990_p3), [#allocation17], 4294967264  ;;  %p4991_p13 = pmov %p4990_p3 }
 0x15e   : > { %p4992_p1 = pmov %p4990_p3 }
 0x15f   : > { %3939 = dma.done.wait (%p4991_p13), [#allocation6], 16  }
 0x160   : > { %3941 = vsyncadd (%p4992_p1), [#allocation6], 4294967280  ;;  %p4993_p5 = pmov %p4992_p1 }
 0x161   : > { %p4994_p11 = pmov %p4992_p1 }
 0x162   : > { %3943 = dma.done.wait (%p4993_p5), [#allocation21], 16  }
 0x163   : > { %3945 = vsyncadd (%p4994_p11), [#allocation21], 4294967280 }
 0x164   : > { %718 = sfence }
 0x165   : > { %v785_v0 = vld [vmem:[#allocation10] sm:$0xff]  ;;  %v786_v1 = vld [vmem:[#allocation10 + $0x8] sm:$0xff]  ;;  %v787_v2 = vld [vmem:[#allocation10 + $0x10] sm:$0xff]  ;;  %v3983_v3 = vmov 0.0|0.0   ;;  %vm3984_vm0 = vmmov 0   ;;  %v3985_v6 = vmov 0.0   ;;  %v1241_v51 = vlaneseq }
 0x166   : > { %3247 = vmatprep.subr.bf16.mxu0 %v3983_v3  ;;  %v3248_v4 = vpack.c.bf16 %v786_v1, %v785_v0  ;;  %v788_v5 = vld [vmem:[#allocation10 + $0x18] sm:$0xff]  ;;  %3151 = vmatprep.mubr.msk.f32.mxu0 %vm3984_vm0, %v3985_v6  ;;  %v870_v7 = vld [vmem:[#allocation12] sm:$0xff]  ;;  %v871_v8 = vld [vmem:[#allocation12 + $0x8] sm:$0xff]  ;;  %vm796_vm1 = vcmask 261120   ;;  %s4995_s19 = sld [smem:[#allocation48_spill]]  ;;  %s4996_s2 = sld [smem:[#allocation44_spill]] }
 0x167   : > { %3253 = vmatprep.subr.bf16.mxu1 %v3983_v3  ;;  %v872_v9 = vld [vmem:[#allocation12 + $0x10] sm:$0xff]  ;;  %v873_v10 = vld [vmem:[#allocation12 + $0x18] sm:$0xff]  ;;  %3162 = vmatprep.mubr.msk.f32.mxu1 %vm3984_vm0, %v3985_v6  ;;  %v3251_v11 = vpack.c.bf16 %v788_v5, %v787_v2  ;;  %v3254_v12 = vpack.c.bf16 %v871_v8, %v870_v7  ;;  %v783_v15 = vld [vmem:[%s672_s11] sm:$0xff]  ;;  %vm1047_vm2 = vcmask 64512   ;;  %s4997_s14 = sld [smem:[#allocation49_spill]]  ;;  %v3986_v26 = vmov 2  }
 0x168   : > { %3249 = vmatpush3.bf16.msra.mxu0 %v3248_v4  ;;  %v3257_v13 = vpack.c.bf16 %v873_v10, %v872_v9  ;;  %v782_v14 = vld [vmem:[%s663_s22] sm:$0xff]  ;;  %v3034_v19 = vld [vmem:[#allocation13] ss:$0 sm:$0xff]  ;;  %3435 = vset.pattern.permute.xlu1 %v3986_v26  ;;  %v3987_v27 = vmov 0   ;;  %v4544_v28 = vld [vmem:[#allocation18] ss:$0 sm:$0xff] }
 0x169   : > { %3250 = vmatprep.subr.bf16.mxu0 %v3983_v3  ;;  %3255 = vmatpush3.bf16.msra.mxu1 %v3254_v12  ;;  %v3988_v34 = vmov 3   ;;  %v3989_v35 = vmov 1   ;;  %v3990_v36 = vmov 4   ;;  %v3991_v37 = vmov 5   ;;  %s4998_s4 = sld [smem:[#allocation50_spill]]  ;;  %v954_v42 = vld [vmem:[#allocation15] sm:$0xff] }
 0x16a   : > { %3256 = vmatprep.subr.bf16.mxu1 %v3983_v3  ;;  %3433 = vset.pattern.permute.xlu0 %v3987_v27  ;;  %v3992_v38 = vmov 6   ;;  %v3993_v39 = vmov 7   ;;  %v955_v43 = vld [vmem:[#allocation15 + $0x8] sm:$0xff]  ;;  %v956_v44 = vld [vmem:[#allocation15 + $0x10] sm:$0xff]  ;;  %v957_v46 = vld [vmem:[#allocation15 + $0x18] sm:$0xff]  ;;  %v1242_v53 = vshrl.u32 %v1241_v51, 7 }
 0x16b   : > { %v3260_v45 = vpack.c.bf16 %v955_v43, %v954_v42  ;;  %v3263_v47 = vpack.c.bf16 %v957_v46, %v956_v44  ;;  %v784_v48 = vld [vmem:[%s681_s1] sm:$0xff]  ;;  %s1235_s27 = sld [smem:[#allocation19]]  ;;  %s1038_s5 = sld [smem:[#allocation2]]  ;;  %vm2653_vm3 = vcmask 130048   ;;  %vm2655_vm4 = vcmask 195584  }
 0x16c   : > { %3252 = vmatpush3.bf16.msra.mxu0 %v3251_v11  ;;  %v4511_v16 = vld [vmem:[%s4995_s19] sm:$0xff]  ;;  %v4569_v56 = vsub.s32 0, %v1242_v53  ;;  %v4571_v57 = vsub.s32 1, %v1242_v53  ;;  %v4573_v58 = vsub.s32 2, %v1242_v53  ;;  %v4575_v59 = vsub.s32 3, %v1242_v53  ;;  %s3042_s17 = sld [smem:[#allocation19 + $0x1]] }
 0x16d   : > { %3259 = vmatprep.subr.bf16.mxu0 %v3983_v3  ;;  %3258 = vmatpush3.bf16.msra.mxu1 %v3257_v13  ;;  %v3032_v17 = vld [vmem:[%s4996_s2] ss:$0 sm:$0xff]  ;;  %v4577_v60 = vsub.s32 4, %v1242_v53  ;;  %v4579_v62 = vsub.s32 5, %v1242_v53  ;;  %v4585_v5 = vsub.s32 6, %v1242_v53  ;;  %v4589_v13 = vsub.s32 7, %v1242_v53 }
 0x16e   : > { %3176 = vmatprep.subr.mxu1 %v3985_v6  ;;  %v4528_v22 = vld [vmem:[%s4997_s14] sm:$0xff]  ;;  %s3043_s22 = sld [smem:[#allocation19 + $0x2]]  ;;  %s3044_s6 = sld [smem:[#allocation19 + $0x3]] }
 0x16f   : > { %3152 = vmatmul.mubr.msk.f32.vlgmr.msra.gmra.mrb[0].mxu0 %vm796_vm1, %v782_v14  ;;  %v4557_v40 = vld [vmem:[%s4998_s4] ss:$0 sm:$0xff]  ;;  %s3045_s21 = sld [smem:[#allocation19 + $0x4]]  ;;  %s3046_s11 = sld [smem:[#allocation19 + $0x5]] }
 0x170   : > { %3173 = vmatprep.mubr.msk.f32.mxu0 %vm3984_vm0, %v3985_v6  ;;  %3163 = vmatmul.mubr.msk.f32.vlgmr.msra.gmra.mrb[0].mxu1 %vm796_vm1, %v783_v15  ;;  %s3047_s1 = sld [smem:[#allocation19 + $0x6]]  ;;  %s3048_s25 = sld [smem:[#allocation19 + $0x7]] }
 0x171   : > { %3177 = vmatpush3.msra.mxu1 %v4511_v16  ;;  %3178 = vmatprep.mubr.msk.f32.mxu1 %vm3984_vm0, %v3985_v6  ;;  %s3994_s29 = smov 120   ;;  %s3031_s19 = sshll.u32 %s4455_s24, 5 }
 0x172   : > { %3181 = vmatprep.subr.mxu1 %v3985_v6  ;;  %3261 = vmatpush3.bf16.msra.mxu0 %v3260_v45  ;;  %s4636_s26 = scalar_lea.vmem [#allocation23], %s3031_s19  ;;  %s3995_s18 = smov 112  }
 0x173   : > { %3262 = vmatprep.subr.bf16.mxu0 %v3983_v3  ;;  %s3996_s2 = smov 104   ;;  %s3997_s28 = smov 8  }
 0x174   : > { %v4600_v43 = vstv %s3043_s22  ;;  %s3998_s15 = smov 16   ;;  %s4999_s12 = sld [smem:[#allocation51_spill]] }
 0x175   : > { %v4607_v51 = vstv %s3045_s21  ;;  %s3999_s21 = smov 24   ;;  %s4000_s3 = smov [#allocation23]  }
 0x176   : > { %3264 = vmatpush3.bf16.msra.mxu0 %v3263_v47  ;;  %v4604_v47 = vstv %s3044_s6  ;;  %s3850_s4 = sshll.u32 %s4000_s3, 4  ;;  %s3851_s4 = int_to_ptr.vmem [resolvable:$false] %s3850_s4 }
 0x177   : > { %3196 = vmatprep.subr.mxu0 %v3985_v6 }
 0x179   : > { %3174 = vmatmul.mubr.msk.f32.vlgmr.msra.gmra.mrb[2].mxu0 %vm796_vm1, %v784_v48 }
 0x17a   : > { %3197 = vmatpush3.msra.mxu0 %v4528_v22  ;;  %3198 = vmatprep.mubr.msk.f32.mxu0 %vm3984_vm0, %v3985_v6 }
 0x17b   : > { %3206 = vmatprep.subr.mxu0 %v3985_v6 }
 0x242   : > { %v866_v18 = vpop.f32.mrb[0].mxu0 }
 0x243   : > { %v4523_v20 = vadd.f32 %v3032_v17, %v866_v18  ;;  %v3153_v21 = vpop.f32.mrb[1].mxu0  ;;  %v950_v23 = vpop.f32.mrb[0].mxu1 }
 0x244   : > { %v4532_v24 = vadd.f32 %v3034_v19, %v950_v23  ;;  %v3164_v25 = vpop.f32.mrb[1].mxu1 }
 0x245   : > { %3179 = vmatmul.mubr.msk.f32.vlgmr.msra.gmra.mrb[2].mxu1 %vm1047_vm2, %v4523_v20  ;;  %v4593_v25 = vstv %s1235_s27 }
 0x246   : > { %3182 = vmatpush3.msra.mxu1 %v4528_v22  ;;  %3183 = vmatprep.mubr.msk.f32.mxu1 %vm3984_vm0, %v3985_v6 }
 0x247   : > { %3186 = vmatprep.subr.mxu1 %v3985_v6 }
 0x249   : > { %3184 = vmatmul.mubr.msk.f32.vlgmr.msra.gmra.mrb[4].mxu1 %vm1047_vm2, %v4532_v24 }
 0x24a   : > { %3188 = vmatprep.mubr.msk.f32.mxu1 %vm3984_vm0, %v3985_v6 }
 0x318   : > { %v1117_v29 = vpop.f32.mrb[2].mxu1 }
 0x319   : > { %v1118_v30 = vadd.f32 %v4544_v28, %v1117_v29  ;;  %v3180_v31 = vpop.f32.mrb[3].mxu1 }
 0x31a   : > { %v4595_v31 = vstv %s1038_s5 }
 0x31b   : > { %1266 = vperm.xlu1 %3435, %v1118_v30   ;;  %1238 = vperm.xlu0 %3433, %v1118_v30  }
 0x31c   : > { %v1198_v32 = vpop.f32.mrb[4].mxu1 }
 0x31d   : > { %v3185_v33 = vpop.f32.mrb[5].mxu1  ;;  %v1199_v41 = vadd.f32 %v4557_v40, %v1198_v32  ;;  %v4597_v32 = vstv %s3042_s17 }
 0x31f   : > { %3436 = vset.pattern.permute.xlu1 %v3988_v34  ;;  %3434 = vset.pattern.permute.xlu0 %v3989_v35 }
 0x320   : > { %1280 = vperm.xlu1 %3436, %v1118_v30   ;;  %1252 = vperm.xlu0 %3434, %v1118_v30  }
 0x324   : > { %3437 = vset.pattern.permute.xlu1 %v3990_v36  ;;  %3438 = vset.pattern.permute.xlu0 %v3991_v37 }
 0x325   : > { %1294 = vperm.xlu1 %3437, %v1118_v30   ;;  %1308 = vperm.xlu0 %3438, %v1118_v30  }
 0x329   : > { %3439 = vset.pattern.permute.xlu1 %v3992_v38 }
 0x32a   : > { %1322 = vperm.xlu1 %3439, %v1118_v30  }
 0x32e   : > { %3440 = vset.pattern.permute.xlu1 %v3993_v39 }
 0x32f   : > { %1336 = vperm.xlu1 %3440, %v1118_v30  }
 0x333   : > { %3441 = vset.pattern.permute.xlu1 %v3987_v27 }
 0x343   : > { %1202 = vxpose.xlu0.b32.start.end [1/1] (short) (narrow) %v1199_v41, 8 }
 0x39a   : > { %v1239_v49 = vpop.permute.xlu0 %1238  ;;  %v1267_v50 = vpop.permute.xlu1 %1266 }
 0x39f   : > { %v1253_v52 = vpop.permute.xlu0 %1252  ;;  %v1281_v54 = vpop.permute.xlu1 %1280 }
 0x3a4   : > { %v1309_v55 = vpop.permute.xlu0 %1308  ;;  %v1295_v61 = vpop.permute.xlu1 %1294 }
 0x3a9   : > { %v1323_v14 = vpop.permute.xlu1 %1322 }
 0x3ae   : > { %v1337_v23 = vpop.permute.xlu1 %1336 }
 0x3c3   : > { %v1218_v63 = vpop.trf.xlu0 }
 0x3c4   : > { %v1244_v0 = vrot.slane %v1218_v63, %v4569_v56  ;;  %v1258_v1 = vrot.slane %v1218_v63, %v4571_v57  ;;  %v1272_v2 = vrot.slane %v1218_v63, %v4573_v58  ;;  %v1286_v4 = vrot.slane %v1218_v63, %v4575_v59 }
 0x3c5   : > { %v1300_v10 = vrot.slane %v1218_v63, %v4577_v60  ;;  %v1314_v12 = vrot.slane %v1218_v63, %v4579_v62  ;;  %v1328_v17 = vrot.slane %v1218_v63, %v4585_v5  ;;  %v1342_v19 = vrot.slane %v1218_v63, %v4589_v13 }
 0x3c6   : > { %v1245_v7 = vadd.f32 %v1244_v0, %v1239_v49  ;;  %v1259_v8 = vadd.f32 %v1258_v1, %v1253_v52  ;;  %v1273_v9 = vadd.f32 %v1272_v2, %v1267_v50  ;;  %v1287_v11 = vadd.f32 %v1286_v4, %v1281_v54 }
 0x3c7   : > { %v1301_v15 = vadd.f32 %v1300_v10, %v1295_v61  ;;  %v1315_v18 = vadd.f32 %v1314_v12, %v1309_v55  ;;  %v1329_v21 = vadd.f32 %v1328_v17, %v1323_v14  ;;  %v1343_v29 = vadd.f32 %v1342_v19, %v1337_v23 }
 0x3c8   : > { %3465 = vtanh.f32 %v1245_v7  ;;  %v4610_v55 = vstv %s3046_s11  ;;  %v4613_v1 = vstv %s3047_s1  ;;  %s5000_s11 = sld [smem:[#allocation38_spill]]  ;;  %s3098_s1 = sshll.u32 %s4122_s20, 9 }
 0x3c9   : > { %3467 = vtanh.f32 %v1259_v8  ;;  %v4616_v8 = vstv %s3048_s25  ;;  %s2774_s25 = sshll.u32 %s4636_s26, 4  ;;  %s4813_s25 = int_to_ptr.vmem [resolvable:$true] %s2774_s25 }
 0x3ca   : > { %3469 = vtanh.f32 %v1273_v9  ;;  %s3846_s14 = scalar_lea.vmem %s4813_s25, 512  ;;  %p3853_p9 = scmp.lt.s32.totalorder %s4813_s25, %s3851_s4 }
 0x3cb   : > { %3471 = vtanh.f32 %v1287_v11  ;;  %p3847_p0 = scmp.ne.s32.totalorder %s4813_s25, %s3846_s14 }
 0x3cc   : > { %3473 = vtanh.f32 %v1301_v15 }
 0x3cd   : > { %3475 = vtanh.f32 %v1315_v18 }
 0x3ce   : > { %3477 = vtanh.f32 %v1329_v21  ;;  %p5002_p6 = scmp.ne.s32.totalorder %s5000_s11, 0 }
 0x3cf   : > { %3479 = vtanh.f32 %v1343_v29 }
 0x3d0   : > { %p3848_p2 = pnand %p3847_p0, %p5002_p6 }
 0x3d2   : > { %v3466_v30 = vpop.eup %3465  ;;  %p3849_p12 = pneg %p3848_p2 }
 0x3d3   : > { %v3468_v33 = vpop.eup %3467  ;;  %v1248_v41 = vmul.f32 %v3466_v30, %v4593_v25 }
 0x3d4   : > { %v3470_v42 = vpop.eup %3469  ;;  %v1262_v45 = vmul.f32 %v3468_v33, %v4597_v32  ;;  %v3036_v33 = vld [vmem:[#allocation16] ss:$0 sm:$0xff] }
 0x3d5   : > { %v1249_v44 = vadd.f32 %v1248_v41, %v4595_v31  ;;  %v3472_v46 = vpop.eup %3471  ;;  %v1276_v49 = vmul.f32 %v3470_v42, %v4600_v43  ;;  %v1034_v41 = vpop.f32.mrb[2].mxu0 }
 0x3d6   : > { %v3474_v50 = vpop.eup %3473  ;;  %v1290_v53 = vmul.f32 %v3472_v46, %v4604_v47  ;;  %v4631_v42 = vadd.f32 %v3036_v33, %v1034_v41 }
 0x3d7   : > { %v1263_v48 = vadd.f32 %v1262_v45, %v1249_v44  ;;  %v3476_v54 = vpop.eup %3475  ;;  %v1304_v63 = vmul.f32 %v3474_v50, %v4607_v51  ;;  %v3175_v44 = vpop.f32.mrb[3].mxu0 }
 0x3d8   : > { %v3478_v0 = vpop.eup %3477  ;;  %v1318_v4 = vmul.f32 %v3476_v54, %v4610_v55  ;;  %3187 = vmatpush3.msra.mxu1 %v4631_v42 }
 0x3d9   : > { %v1277_v52 = vadd.f32 %v1276_v49, %v1263_v48  ;;  %v3480_v7 = vpop.eup %3479  ;;  %v1332_v10 = vmul.f32 %v3478_v0, %v4613_v1  ;;  %3191 = vmatprep.subr.mxu1 %v3985_v6 }
 0x3da   : > { %v1346_v12 = vmul.f32 %v3480_v7, %v4616_v8 }
 0x3db   : > { %v1291_v61 = vadd.f32 %v1290_v53, %v1277_v52 }
 0x3dd   : > { %v1305_v2 = vadd.f32 %v1304_v63, %v1291_v61 }
 0x3df   : > { %v1319_v9 = vadd.f32 %v1318_v4, %v1305_v2 }
 0x3e1   : > { %v1333_v11 = vadd.f32 %v1332_v10, %v1319_v9 }
 0x3e3   : > { %v1347_v14 = vadd.f32 %v1346_v12, %v1333_v11 }
 0x3e5   : > { %v1348_v15 = vsel %vm1047_vm2, %v1347_v14, -inf }
 0x3e6   : > { %1349 = vmax.xlane.f32.xlu1 %v1348_v15 }
 0x3f7   : > { %1444 = vrot.lane.b32.xlu1 %v4523_v20, %s3994_s29 }
 0x3fb   : > { %1526 = vrot.lane.b32.xlu1 %v4532_v24, %s3994_s29 }
 0x473   : > { %v1350_v17 = vpop.xlane.xlu1 %1349 }
 0x474   : > { %v1351_v18 = vsub.f32 %v1347_v14, %v1350_v17 }
 0x476   : > { %v1352_v19 = vmul.f32 1.442695, %v1351_v18 }
 0x477   : > { %v1445_v21 = vpop.permute.xlu1 %1444 }
 0x478   : > { %3481 = vpow2.f32 %v1352_v19 }
 0x47b   : > { %v1527_v23 = vpop.permute.xlu1 %1526 }
 0x47c   : > { %3199 = vmatmul.mubr.msk.f32.vlgmr.msra.gmra.mrb[4].mxu0 %vm1047_vm2, %v1527_v23 }
 0x47d   : > { %3207 = vmatpush3.msra.mxu0 %v4511_v16  ;;  %3208 = vmatprep.mubr.msk.f32.mxu0 %vm3984_vm0, %v3985_v6 }
 0x47e   : > { %3216 = vmatprep.subr.mxu0 %v3985_v6 }
 0x482   : > { %v3482_v29 = vpop.eup %3481 }
 0x483   : > { %v1354_v30 = vsel %vm1047_vm2, %v3482_v29, 0.0 }
 0x484   : > { %1355 = vadd.xlane.f32.xlu0 %v1354_v30 }
 0x511   : > { %v1356_v45 = vpop.xlane.xlu0 %1355 }
 0x512   : > { %3483 = vrcp.f32 %v1356_v45 }
 0x51c   : > { %v3484_v46 = vpop.eup %3483 }
 0x51d   : > { %v1358_v48 = vmul.f32 %v3484_v46, %v1356_v45 }
 0x51f   : > { %v1359_v49 = vsub.f32 2.0, %v1358_v48 }
 0x521   : > { %v1360_v50 = vmul.f32 %v3484_v46, %v1359_v49 }
 0x523   : > { %v1361_v52 = vmul.f32 %v3482_v29, %v1360_v50 }
 0x525   : > { %1362 = vst.msk [vmem:[%s4636_s26] sm:$0xff] %vm1047_vm2, %v1361_v52  ;;  %3189 = vmatmul.mubr.msk.f32.vlgmr.msra.gmra.mrb[6].mxu1 %vm1047_vm2, %v1361_v52 }
 0x526   : > { %3192 = vmatpush3.msra.mxu1 %v4511_v16  ;;  %3193 = vmatprep.mubr.msk.f32.mxu1 %vm3984_vm0, %v3985_v6 }
 0x527   : > { %3201 = vmatprep.subr.mxu1 %v3985_v6 }
 0x529   : > { %3194 = vmatmul.mubr.msk.f32.vlgmr.msra.gmra.mrb[8].mxu1 %vm1047_vm2, %v1445_v21 }
 0x52a   : > { %3203 = vmatprep.mubr.msk.f32.mxu1 %vm3984_vm0, %v3985_v6 }
 0x54f   : > { %v1596_v53 = vpop.f32.mrb[4].mxu0 }
 0x550   : > { %v3200_v54 = vpop.f32.mrb[5].mxu0  ;;  %v1597_v7 = vadd.f32 %v4557_v40, %v1596_v53 }
 0x5f8   : > { %v4648_v61 = vpop.f32.mrb[6].mxu1 }
 0x5f9   : > { %v3190_v63 = vpop.f32.mrb[7].mxu1 }
 0x5fc   : > { %v1514_v0 = vpop.f32.mrb[8].mxu1 }
 0x5fd   : > { %v1515_v2 = vadd.f32 %v4544_v28, %v1514_v0  ;;  %v3195_v4 = vpop.f32.mrb[9].mxu1 }
 0x5ff   : > { %1705 = vperm.xlu0 %3438, %v1515_v2   ;;  %1635 = vperm.xlu1 %3441, %v1515_v2  }
 0x603   : > { %3442 = vset.pattern.permute.xlu1 %v3989_v35  ;;  %3448 = vset.pattern.permute.xlu0 %v3987_v27 }
 0x604   : > { %1649 = vperm.xlu1 %3442, %v1515_v2  }
 0x608   : > { %3443 = vset.pattern.permute.xlu1 %v3986_v26 }
 0x609   : > { %1663 = vperm.xlu1 %3443, %v1515_v2  }
 0x60d   : > { %3444 = vset.pattern.permute.xlu1 %v3988_v34 }
 0x60e   : > { %1677 = vperm.xlu1 %3444, %v1515_v2  }
 0x612   : > { %3445 = vset.pattern.permute.xlu1 %v3990_v36 }
 0x613   : > { %1691 = vperm.xlu1 %3445, %v1515_v2  }
 0x617   : > { %3446 = vset.pattern.permute.xlu1 %v3992_v38 }
 0x618   : > { %1719 = vperm.xlu1 %3446, %v1515_v2  }
 0x61c   : > { %3447 = vset.pattern.permute.xlu1 %v3993_v39 }
 0x61d   : > { %1733 = vperm.xlu1 %3447, %v1515_v2  }
 0x646   : > { %1600 = vxpose.xlu1.b32.start.end [1/1] (short) (narrow) %v1597_v7, 8 }
 0x664   : > { %3449 = vset.pattern.permute.xlu1 %v3989_v35 }
 0x67e   : > { %v1636_v9 = vpop.permute.xlu1 %1635  ;;  %v1706_v50 = vpop.permute.xlu0 %1705 }
 0x683   : > { %v1650_v10 = vpop.permute.xlu1 %1649 }
 0x688   : > { %v1664_v11 = vpop.permute.xlu1 %1663 }
 0x68d   : > { %v1678_v12 = vpop.permute.xlu1 %1677 }
 0x692   : > { %v1692_v14 = vpop.permute.xlu1 %1691 }
 0x697   : > { %v1720_v15 = vpop.permute.xlu1 %1719 }
 0x69c   : > { %v1734_v17 = vpop.permute.xlu1 %1733 }
 0x6c6   : > { %v1616_v18 = vpop.trf.xlu1 }
 0x6c7   : > { %v1641_v19 = vrot.slane %v1616_v18, %v4569_v56  ;;  %v1655_v21 = vrot.slane %v1616_v18, %v4571_v57  ;;  %v1669_v23 = vrot.slane %v1616_v18, %v4573_v58  ;;  %v1683_v29 = vrot.slane %v1616_v18, %v4575_v59 }
 0x6c8   : > { %v1697_v44 = vrot.slane %v1616_v18, %v4577_v60  ;;  %v1711_v46 = vrot.slane %v1616_v18, %v4579_v62  ;;  %v1725_v49 = vrot.slane %v1616_v18, %v4585_v5  ;;  %v1739_v53 = vrot.slane %v1616_v18, %v4589_v13 }
 0x6c9   : > { %v1642_v30 = vadd.f32 %v1641_v19, %v1636_v9  ;;  %v1656_v33 = vadd.f32 %v1655_v21, %v1650_v10  ;;  %v1670_v41 = vadd.f32 %v1669_v23, %v1664_v11  ;;  %v1684_v45 = vadd.f32 %v1683_v29, %v1678_v12 }
 0x6ca   : > { %v1698_v48 = vadd.f32 %v1697_v44, %v1692_v14  ;;  %v1712_v52 = vadd.f32 %v1711_v46, %v1706_v50  ;;  %v1726_v54 = vadd.f32 %v1725_v49, %v1720_v15  ;;  %v1740_v63 = vadd.f32 %v1739_v53, %v1734_v17 }
 0x6cb   : > { %3485 = vtanh.f32 %v1642_v30 }
 0x6cc   : > { %3487 = vtanh.f32 %v1656_v33 }
 0x6cd   : > { %3489 = vtanh.f32 %v1670_v41 }
 0x6ce   : > { %3491 = vtanh.f32 %v1684_v45 }
 0x6cf   : > { %3493 = vtanh.f32 %v1698_v48 }
 0x6d0   : > { %3495 = vtanh.f32 %v1712_v52 }
 0x6d1   : > { %3497 = vtanh.f32 %v1726_v54 }
 0x6d2   : > { %3499 = vtanh.f32 %v1740_v63 }
 0x6d5   : > { %v3486_v0 = vpop.eup %3485 }
 0x6d6   : > { %v3488_v2 = vpop.eup %3487  ;;  %v1645_v4 = vmul.f32 %v3486_v0, %v4593_v25 }
 0x6d7   : > { %v3490_v7 = vpop.eup %3489  ;;  %v1659_v10 = vmul.f32 %v3488_v2, %v4597_v32 }
 0x6d8   : > { %v1646_v9 = vadd.f32 %v1645_v4, %v4595_v31  ;;  %v3492_v11 = vpop.eup %3491  ;;  %v1673_v14 = vmul.f32 %v3490_v7, %v4600_v43 }
 0x6d9   : > { %v3494_v18 = vpop.eup %3493  ;;  %v1687_v15 = vmul.f32 %v3492_v11, %v4604_v47 }
 0x6da   : > { %v1660_v12 = vadd.f32 %v1659_v10, %v1646_v9  ;;  %v3496_v17 = vpop.eup %3495  ;;  %v1701_v23 = vmul.f32 %v3494_v18, %v4607_v51 }
 0x6db   : > { %v3498_v29 = vpop.eup %3497  ;;  %v1715_v33 = vmul.f32 %v3496_v17, %v4610_v55 }
 0x6dc   : > { %v1674_v19 = vadd.f32 %v1673_v14, %v1660_v12  ;;  %v3500_v41 = vpop.eup %3499  ;;  %v1729_v45 = vmul.f32 %v3498_v29, %v4613_v1 }
 0x6dd   : > { %v1743_v48 = vmul.f32 %v3500_v41, %v4616_v8 }
 0x6de   : > { %v1688_v21 = vadd.f32 %v1687_v15, %v1674_v19 }
 0x6e0   : > { %v1702_v30 = vadd.f32 %v1701_v23, %v1688_v21 }
 0x6e2   : > { %v1716_v44 = vadd.f32 %v1715_v33, %v1702_v30 }
 0x6e4   : > { %v1730_v46 = vadd.f32 %v1729_v45, %v1716_v44 }
 0x6e6   : > { %v1744_v49 = vadd.f32 %v1743_v48, %v1730_v46 }
 0x6e8   : > { %v1745_v50 = vsel %vm1047_vm2, %v1744_v49, -inf }
 0x6e9   : > { %1746 = vmax.xlane.f32.xlu0 %v1745_v50 }
 0x6ff   : > { %1846 = vrot.lane.b32.xlu0 %v4523_v20, %s3995_s18 }
 0x703   : > { %1762 = vrot.lane.b32.xlu0 %v4631_v42, %s3994_s29 }
 0x707   : > { %1928 = vrot.lane.b32.xlu0 %v4532_v24, %s3995_s18 }
 0x776   : > { %v1747_v52 = vpop.xlane.xlu0 %1746 }
 0x777   : > { %v1748_v53 = vsub.f32 %v1744_v49, %v1747_v52 }
 0x779   : > { %v1749_v54 = vmul.f32 1.442695, %v1748_v53 }
 0x77a   : > { %v1847_v63 = vpop.permute.xlu0 %1846 }
 0x77b   : > { %3501 = vpow2.f32 %v1749_v54  ;;  %3209 = vmatmul.mubr.msk.f32.vlgmr.msra.gmra.mrb[6].mxu0 %vm1047_vm2, %v1847_v63 }
 0x77c   : > { %3218 = vmatprep.mubr.msk.f32.mxu0 %vm3984_vm0, %v3985_v6 }
 0x77e   : > { %v1763_v0 = vpop.permute.xlu0 %1762 }
 0x77f   : > { %3202 = vmatpush3.msra.mxu1 %v1763_v0 }
 0x780   : > { %3211 = vmatprep.subr.mxu1 %v3985_v6 }
 0x782   : > { %v1929_v18 = vpop.permute.xlu0 %1928 }
 0x785   : > { %v3502_v2 = vpop.eup %3501 }
 0x786   : > { %v1751_v4 = vsel %vm1047_vm2, %v3502_v2, 0.0 }
 0x787   : > { %1752 = vadd.xlane.f32.xlu1 %v1751_v4 }
 0x814   : > { %v1753_v7 = vpop.xlane.xlu1 %1752 }
 0x815   : > { %3503 = vrcp.f32 %v1753_v7 }
 0x81f   : > { %v3504_v9 = vpop.eup %3503 }
 0x820   : > { %v1755_v10 = vmul.f32 %v3504_v9, %v1753_v7 }
 0x822   : > { %v1756_v11 = vsub.f32 2.0, %v1755_v10 }
 0x824   : > { %v1757_v12 = vmul.f32 %v3504_v9, %v1756_v11 }
 0x826   : > { %v1758_v14 = vmul.f32 %v3502_v2, %v1757_v12 }
 0x828   : > { %3061 = vst.msk [vmem:[%s4636_s26 + $0x8] sm:$0xff] %vm1047_vm2, %v1758_v14  ;;  %3204 = vmatmul.mubr.msk.f32.vlgmr.msra.gmra.mrb[10].mxu1 %vm1047_vm2, %v1758_v14 }
 0x829   : > { %3212 = vmatpush3.msra.mxu1 %v4528_v22  ;;  %3213 = vmatprep.mubr.msk.f32.mxu1 %vm3984_vm0, %v3985_v6 }
 0x82a   : > { %3221 = vmatprep.subr.mxu1 %v3985_v6 }
 0x82c   : > { %3214 = vmatmul.mubr.msk.f32.vlgmr.msra.gmra.mrb[12].mxu1 %vm1047_vm2, %v1929_v18 }
 0x82d   : > { %3222 = vmatpush3.msra.mxu1 %v4511_v16  ;;  %3223 = vmatprep.mubr.msk.f32.mxu1 %vm3984_vm0, %v3985_v6 }
 0x82e   : > { %3231 = vmatprep.subr.mxu1 %v3985_v6 }
 0x84e   : > { %v1916_v19 = vpop.f32.mrb[6].mxu0 }
 0x84f   : > { %v1917_v15 = vadd.f32 %v4544_v28, %v1916_v19  ;;  %v3210_v17 = vpop.f32.mrb[7].mxu0 }
 0x851   : > { %2051 = vperm.xlu1 %3449, %v1917_v15   ;;  %2037 = vperm.xlu0 %3448, %v1917_v15  }
 0x855   : > { %3453 = vset.pattern.permute.xlu1 %v3991_v37  ;;  %3450 = vset.pattern.permute.xlu0 %v3986_v26 }
 0x856   : > { %2107 = vperm.xlu1 %3453, %v1917_v15   ;;  %2065 = vperm.xlu0 %3450, %v1917_v15  }
 0x85a   : > { %3454 = vset.pattern.permute.xlu1 %v3992_v38  ;;  %3451 = vset.pattern.permute.xlu0 %v3988_v34 }
 0x85b   : > { %2121 = vperm.xlu1 %3454, %v1917_v15   ;;  %2079 = vperm.xlu0 %3451, %v1917_v15  }
 0x85f   : > { %3452 = vset.pattern.permute.xlu0 %v3990_v36 }
 0x860   : > { %2093 = vperm.xlu0 %3452, %v1917_v15  }
 0x864   : > { %3455 = vset.pattern.permute.xlu0 %v3993_v39 }
 0x865   : > { %2135 = vperm.xlu0 %3455, %v1917_v15  }
 0x869   : > { %3456 = vset.pattern.permute.xlu0 %v3987_v27 }
 0x8d0   : > { %v2052_v33 = vpop.permute.xlu1 %2051  ;;  %v2038_v41 = vpop.permute.xlu0 %2037 }
 0x8d5   : > { %v2108_v44 = vpop.permute.xlu1 %2107  ;;  %v2066_v45 = vpop.permute.xlu0 %2065 }
 0x8da   : > { %v2122_v46 = vpop.permute.xlu1 %2121  ;;  %v2080_v27 = vpop.permute.xlu0 %2079 }
 0x8df   : > { %v2094_v4 = vpop.permute.xlu0 %2093 }
 0x8e4   : > { %v2136_v14 = vpop.permute.xlu0 %2135 }
 0x8fb   : > { %v4709_v16 = vpop.f32.mrb[10].mxu1 }
 0x8fc   : > { %v3205_v21 = vpop.f32.mrb[11].mxu1 }
 0x8ff   : > { %v1998_v23 = vpop.f32.mrb[12].mxu1 }
 0x900   : > { %v1999_v29 = vadd.f32 %v4557_v40, %v1998_v23  ;;  %v3215_v30 = vpop.f32.mrb[13].mxu1 }
 0x902   : > { %2002 = vxpose.xlu1.b32.start.end [1/1] (short) (narrow) %v1999_v29, 8 }
 0x920   : > { %2247 = vrot.lane.b32.xlu1 %v4523_v20, %s3996_s2 }
 0x921   : > { %3457 = vset.pattern.permute.xlu1 %v3989_v35 }
 0x982   : > { %v2018_v48 = vpop.trf.xlu1 }
 0x983   : > { %v2043_v49 = vrot.slane %v2018_v48, %v4569_v56  ;;  %v2057_v50 = vrot.slane %v2018_v48, %v4571_v57  ;;  %v2071_v52 = vrot.slane %v2018_v48, %v4573_v58  ;;  %v2085_v53 = vrot.slane %v2018_v48, %v4575_v59 }
 0x984   : > { %v2099_v35 = vrot.slane %v2018_v48, %v4577_v60  ;;  %v2113_v2 = vrot.slane %v2018_v48, %v4579_v62  ;;  %v2127_v9 = vrot.slane %v2018_v48, %v4585_v5  ;;  %v2141_v11 = vrot.slane %v2018_v48, %v4589_v13 }
 0x985   : > { %v2044_v54 = vadd.f32 %v2043_v49, %v2038_v41  ;;  %v2058_v63 = vadd.f32 %v2057_v50, %v2052_v33  ;;  %v2072_v20 = vadd.f32 %v2071_v52, %v2066_v45  ;;  %v2086_v0 = vadd.f32 %v2085_v53, %v2080_v27 }
 0x986   : > { %v2100_v7 = vadd.f32 %v2099_v35, %v2094_v4  ;;  %v2114_v10 = vadd.f32 %v2113_v2, %v2108_v44  ;;  %v2128_v12 = vadd.f32 %v2127_v9, %v2122_v46  ;;  %v2142_v18 = vadd.f32 %v2141_v11, %v2136_v14 }
 0x987   : > { %3505 = vtanh.f32 %v2044_v54 }
 0x988   : > { %3507 = vtanh.f32 %v2058_v63 }
 0x989   : > { %3509 = vtanh.f32 %v2072_v20 }
 0x98a   : > { %3511 = vtanh.f32 %v2086_v0 }
 0x98b   : > { %3513 = vtanh.f32 %v2100_v7 }
 0x98c   : > { %3515 = vtanh.f32 %v2114_v10 }
 0x98d   : > { %3517 = vtanh.f32 %v2128_v12 }
 0x98e   : > { %3519 = vtanh.f32 %v2142_v18 }
 0x991   : > { %v3506_v19 = vpop.eup %3505 }
 0x992   : > { %v3508_v15 = vpop.eup %3507  ;;  %v2248_v17 = vpop.permute.xlu1 %2247  ;;  %v2047_v21 = vmul.f32 %v3506_v19, %v4593_v25 }
 0x993   : > { %v3510_v23 = vpop.eup %3509  ;;  %3224 = vmatmul.mubr.msk.f32.vlgmr.msra.gmra.mrb[14].mxu1 %vm1047_vm2, %v2248_v17  ;;  %v2061_v30 = vmul.f32 %v3508_v15, %v4597_v32 }
 0x994   : > { %v2048_v29 = vadd.f32 %v2047_v21, %v4595_v31  ;;  %3233 = vmatprep.mubr.msk.f32.mxu1 %vm3984_vm0, %v3985_v6  ;;  %v3512_v33 = vpop.eup %3511  ;;  %v2075_v44 = vmul.f32 %v3510_v23, %v4600_v43 }
 0x995   : > { %v3514_v45 = vpop.eup %3513  ;;  %v2089_v27 = vmul.f32 %v3512_v33, %v4604_v47 }
 0x996   : > { %v2062_v41 = vadd.f32 %v2061_v30, %v2048_v29  ;;  %v3516_v48 = vpop.eup %3515  ;;  %v2103_v50 = vmul.f32 %v3514_v45, %v4607_v51 }
 0x997   : > { %v3518_v52 = vpop.eup %3517  ;;  %v2117_v54 = vmul.f32 %v3516_v48, %v4610_v55 }
 0x998   : > { %v2076_v46 = vadd.f32 %v2075_v44, %v2062_v41  ;;  %v3520_v63 = vpop.eup %3519  ;;  %v2131_v35 = vmul.f32 %v3518_v52, %v4613_v1 }
 0x999   : > { %v2145_v2 = vmul.f32 %v3520_v63, %v4616_v8 }
 0x99a   : > { %v2090_v49 = vadd.f32 %v2089_v27, %v2076_v46 }
 0x99c   : > { %v2104_v53 = vadd.f32 %v2103_v50, %v2090_v49 }
 0x99e   : > { %v2118_v20 = vadd.f32 %v2117_v54, %v2104_v53 }
 0x9a0   : > { %v2132_v0 = vadd.f32 %v2131_v35, %v2118_v20 }
 0x9a2   : > { %v2146_v4 = vadd.f32 %v2145_v2, %v2132_v0 }
 0x9a4   : > { %v2147_v7 = vsel %vm1047_vm2, %v2146_v4, -inf }
 0x9a5   : > { %2148 = vmax.xlane.f32.xlu0 %v2147_v7 }
 0xa32   : > { %v2149_v9 = vpop.xlane.xlu0 %2148 }
 0xa33   : > { %v2150_v10 = vsub.f32 %v2146_v4, %v2149_v9 }
 0xa35   : > { %v2151_v11 = vmul.f32 1.442695, %v2150_v10 }
 0xa37   : > { %3521 = vpow2.f32 %v2151_v11 }
 0xa41   : > { %v3522_v12 = vpop.eup %3521 }
 0xa42   : > { %v2153_v14 = vsel %vm1047_vm2, %v3522_v12, 0.0 }
 0xa43   : > { %2154 = vadd.xlane.f32.xlu0 %v2153_v14 }
 0xa59   : > { %2163 = vrot.lane.b32.xlu0 %v4631_v42, %s3995_s18  ;;  %s5001_s18 = sld [smem:[#allocation53_spill]] }
 0xa5d   : > { %2329 = vrot.lane.b32.xlu0 %v4532_v24, %s3996_s2 }
 0xa66   : > { %v2317_v18 = vpop.f32.mrb[14].mxu1 }
 0xa67   : > { %v2318_v19 = vadd.f32 %v4544_v28, %v2317_v18  ;;  %v3225_v15 = vpop.f32.mrb[15].mxu1 }
 0xa69   : > { %2452 = vperm.xlu1 %3457, %v2318_v19   ;;  %2438 = vperm.xlu0 %3456, %v2318_v19  }
 0xa6d   : > { %3458 = vset.pattern.permute.xlu1 %v3986_v26  ;;  %3459 = vset.pattern.permute.xlu0 %v3988_v34 }
 0xa6e   : > { %2466 = vperm.xlu1 %3458, %v2318_v19   ;;  %2480 = vperm.xlu0 %3459, %v2318_v19  }
 0xa72   : > { %3460 = vset.pattern.permute.xlu1 %v3990_v36  ;;  %3462 = vset.pattern.permute.xlu0 %v3992_v38 }
 0xa73   : > { %2494 = vperm.xlu1 %3460, %v2318_v19   ;;  %2522 = vperm.xlu0 %3462, %v2318_v19  }
 0xa77   : > { %3461 = vset.pattern.permute.xlu1 %v3991_v37  ;;  %3464 = vset.pattern.permute.xlu0 %v3993_v39 }
 0xa78   : > { %2508 = vperm.xlu1 %3461, %v2318_v19  }
 0xa7c   : > { %3463 = vset.pattern.permute.xlu1 %v3993_v39 }
 0xa7d   : > { %2536 = vperm.xlu1 %3463, %v2318_v19  }
 0xad0   : > { %v2155_v24 = vpop.xlane.xlu0 %2154 }
 0xad1   : > { %3523 = vrcp.f32 %v2155_v24 }
 0xad4   : > { %v2164_v26 = vpop.permute.xlu0 %2163 }
 0xad5   : > { %3217 = vmatpush3.msra.mxu0 %v2164_v26 }
 0xad6   : > { %3226 = vmatprep.subr.mxu0 %v3985_v6 }
 0xad8   : > { %v2330_v37 = vpop.permute.xlu0 %2329 }
 0xadb   : > { %v3524_v28 = vpop.eup %3523 }
 0xadc   : > { %v2157_v34 = vmul.f32 %v3524_v28, %v2155_v24 }
 0xade   : > { %v2158_v36 = vsub.f32 2.0, %v2157_v34 }
 0xae0   : > { %v2159_v38 = vmul.f32 %v3524_v28, %v2158_v36 }
 0xae2   : > { %v2160_v17 = vmul.f32 %v3522_v12, %v2159_v38 }
 0xae4   : > { %3074 = vst.msk [vmem:[%s4636_s26 + $0x10] sm:$0xff] %vm1047_vm2, %v2160_v17  ;;  %3219 = vmatmul.mubr.msk.f32.vlgmr.msra.gmra.mrb[8].mxu0 %vm1047_vm2, %v2160_v17 }
 0xae5   : > { %3227 = vmatpush3.msra.mxu0 %v4528_v22  ;;  %3228 = vmatprep.mubr.msk.f32.mxu0 %vm3984_vm0, %v3985_v6 }
 0xae6   : > { %3265 = vmatprep.subr.bf16.mxu0 %v3983_v3 }
 0xae8   : > { %3229 = vmatmul.mubr.msk.f32.vlgmr.msra.gmra.mrb[10].mxu0 %vm1047_vm2, %v2330_v37  ;;  %v2453_v22 = vpop.permute.xlu1 %2452  ;;  %v2439_v46 = vpop.permute.xlu0 %2438 }
 0xae9   : > { %3244 = vmatprep.mubr.msk.f32.mxu0 %vm3984_vm0, %v3985_v6 }
 0xaed   : > { %v2467_v33 = vpop.permute.xlu1 %2466  ;;  %v2481_v54 = vpop.permute.xlu0 %2480 }
 0xaf2   : > { %v2495_v41 = vpop.permute.xlu1 %2494 }
 0xaf7   : > { %v2509_v44 = vpop.permute.xlu1 %2508 }
 0xafc   : > { %v2537_v45 = vpop.permute.xlu1 %2536 }
 0xbb7   : > { %v4760_v39 = vpop.f32.mrb[8].mxu0 }
 0xbb8   : > { %v3220_v21 = vpop.f32.mrb[9].mxu0 }
 0xbbb   : > { %v2399_v23 = vpop.f32.mrb[10].mxu0 }
 0xbbc   : > { %v2400_v29 = vadd.f32 %v4557_v40, %v2399_v23  ;;  %v3230_v30 = vpop.f32.mrb[11].mxu0 }
 0xbbe   : > { %2403 = vxpose.xlu1.b32.start.end [1/1] (short) (narrow) %v2400_v29, 8 }
 0xbdc   : > { %2641 = vrot.lane.b32.xlu1 %v4709_v16, %s3997_s28 }
 0xc3e   : > { %v2419_v27 = vpop.trf.xlu1 }
 0xc3f   : > { %v2444_v6 = vrot.slane %v2419_v27, %v4569_v56  ;;  %v2458_v48 = vrot.slane %v2419_v27, %v4571_v57  ;;  %v2472_v49 = vrot.slane %v2419_v27, %v4573_v58  ;;  %v2486_v40 = vrot.slane %v2419_v27, %v4575_v59  ;;  %v2523_v59 = vpop.permute.xlu0 %2522 }
 0xc40   : > { %v2500_v16 = vrot.slane %v2419_v27, %v4577_v60  ;;  %v2514_v20 = vrot.slane %v2419_v27, %v4579_v62  ;;  %v2528_v56 = vrot.slane %v2419_v27, %v4585_v5  ;;  %v2542_v58 = vrot.slane %v2419_v27, %v4589_v13 }
 0xc41   : > { %v2445_v50 = vadd.f32 %v2444_v6, %v2439_v46  ;;  %v2459_v52 = vadd.f32 %v2458_v48, %v2453_v22  ;;  %v2473_v53 = vadd.f32 %v2472_v49, %v2467_v33  ;;  %v2487_v63 = vadd.f32 %v2486_v40, %v2481_v54 }
 0xc42   : > { %v2501_v35 = vadd.f32 %v2500_v16, %v2495_v41  ;;  %v2515_v57 = vadd.f32 %v2514_v20, %v2509_v44  ;;  %v2529_v0 = vadd.f32 %v2528_v56, %v2523_v59  ;;  %v2543_v2 = vadd.f32 %v2542_v58, %v2537_v45  ;;  %v2659_v41 = vld [vmem:[%s4999_s12 + $0x10] sm:$0xff]  ;;  %v2660_v45 = vld [vmem:[%s4999_s12 + $0x18] sm:$0xff] }
 0xc43   : > { %3525 = vtanh.f32 %v2445_v50  ;;  %v3269_v46 = vpack.c.bf16 %v2660_v45, %v2659_v41 }
 0xc44   : > { %3527 = vtanh.f32 %v2459_v52 }
 0xc45   : > { %3529 = vtanh.f32 %v2473_v53 }
 0xc46   : > { %3531 = vtanh.f32 %v2487_v63 }
 0xc47   : > { %3533 = vtanh.f32 %v2501_v35 }
 0xc48   : > { %3535 = vtanh.f32 %v2515_v57 }
 0xc49   : > { %3537 = vtanh.f32 %v2529_v0 }
 0xc4a   : > { %3539 = vtanh.f32 %v2543_v2 }
 0xc4d   : > { %v3526_v60 = vpop.eup %3525 }
 0xc4e   : > { %v3528_v4 = vpop.eup %3527  ;;  %v2448_v7 = vmul.f32 %v3526_v60, %v4593_v25  ;;  %v2642_v48 = vpop.permute.xlu1 %2641 }
 0xc4f   : > { %v3530_v62 = vpop.eup %3529  ;;  %v2462_v5 = vmul.f32 %v3528_v4, %v4597_v32  ;;  %v2652_v40 = vsel %vm1047_vm2, %v4648_v61, %v2642_v48 }
 0xc50   : > { %v2449_v9 = vadd.f32 %v2448_v7, %v4595_v31  ;;  %v3532_v10 = vpop.eup %3531  ;;  %v2476_v13 = vmul.f32 %v3530_v62, %v4600_v43 }
 0xc51   : > { %v3534_v12 = vpop.eup %3533  ;;  %v2490_v18 = vmul.f32 %v3532_v10, %v4604_v47 }
 0xc52   : > { %v2463_v11 = vadd.f32 %v2462_v5, %v2449_v9  ;;  %v3536_v19 = vpop.eup %3535  ;;  %v2504_v24 = vmul.f32 %v3534_v12, %v4607_v51 }
 0xc53   : > { %v3538_v26 = vpop.eup %3537  ;;  %v2518_v28 = vmul.f32 %v3536_v19, %v4610_v55 }
 0xc54   : > { %v2477_v14 = vadd.f32 %v2476_v13, %v2463_v11  ;;  %v3540_v34 = vpop.eup %3539  ;;  %v2532_v32 = vmul.f32 %v3538_v26, %v4613_v1 }
 0xc55   : > { %v2546_v38 = vmul.f32 %v3540_v34, %v4616_v8 }
 0xc56   : > { %v2491_v15 = vadd.f32 %v2490_v18, %v2477_v14 }
 0xc58   : > { %v2505_v25 = vadd.f32 %v2504_v24, %v2491_v15 }
 0xc5a   : > { %v2519_v31 = vadd.f32 %v2518_v28, %v2505_v25 }
 0xc5c   : > { %v2533_v36 = vadd.f32 %v2532_v32, %v2519_v31 }
 0xc5e   : > { %v2547_v43 = vadd.f32 %v2546_v38, %v2533_v36 }
 0xc60   : > { %v2548_v17 = vsel %vm1047_vm2, %v2547_v43, -inf }
 0xc61   : > { %2549 = vmax.xlane.f32.xlu0 %v2548_v17 }
 0xcee   : > { %v2550_v47 = vpop.xlane.xlu0 %2549 }
 0xcef   : > { %v2551_v37 = vsub.f32 %v2547_v43, %v2550_v47 }
 0xcf1   : > { %v2552_v21 = vmul.f32 1.442695, %v2551_v37 }
 0xcf3   : > { %3541 = vpow2.f32 %v2552_v21 }
 0xcfd   : > { %v3542_v51 = vpop.eup %3541 }
 0xcfe   : > { %v2554_v23 = vsel %vm1047_vm2, %v3542_v51, 0.0 }
 0xcff   : > { %2555 = vadd.xlane.f32.xlu0 %v2554_v23 }
 0xd15   : > { %2564 = vrot.lane.b32.xlu0 %v4631_v42, %s3996_s2  ;;  %v2657_v42 = vld [vmem:[%s4999_s12] sm:$0xff]  ;;  %s4811_s2 = scalar_lea.hbm %s5001_s18, %s3098_s1 }
 0xd19   : > { %2645 = vrot.lane.b32.xlu0 %v4760_v39, %s3998_s15  ;;  %v2658_v39 = vld [vmem:[%s4999_s12 + $0x8] sm:$0xff]  ;;  %s2748_s15 = scalar_lea.sflag [#allocation24], %s4455_s24 }
 0xd1a   : > { %v3266_v44 = vpack.c.bf16 %v2658_v39, %v2657_v42 }
 0xd1c   : > { %3267 = vmatpush3.bf16.msra.mxu0 %v3266_v44 }
 0xd1d   : > { %3268 = vmatprep.subr.bf16.mxu0 %v3983_v3 }
 0xd20   : > { %3270 = vmatpush3.bf16.msra.mxu0 %v3269_v46 }
 0xd8c   : > { %v2556_v55 = vpop.xlane.xlu0 %2555 }
 0xd8d   : > { %3543 = vrcp.f32 %v2556_v55 }
 0xd90   : > { %v2565_v1 = vpop.permute.xlu0 %2564 }
 0xd91   : > { %3232 = vmatpush3.msra.mxu1 %v2565_v1 }
 0xd94   : > { %v2646_v49 = vpop.permute.xlu0 %2645 }
 0xd95   : > { %v2654_v50 = vsel %vm2653_vm3, %v2652_v40, %v2646_v49 }
 0xd97   : > { %v3544_v8 = vpop.eup %3543 }
 0xd98   : > { %v2558_v29 = vmul.f32 %v3544_v8, %v2556_v55 }
 0xd9a   : > { %v2559_v30 = vsub.f32 2.0, %v2558_v29 }
 0xd9c   : > { %v2560_v22 = vmul.f32 %v3544_v8, %v2559_v30 }
 0xd9e   : > { %v2561_v33 = vmul.f32 %v3542_v51, %v2560_v22 }
 0xda0   : > { %3087 = vst.msk [vmem:[%s4636_s26 + $0x18] sm:$0xff] %vm1047_vm2, %v2561_v33  ;;  %3234 = vmatmul.mubr.msk.f32.vlgmr.msra.gmra.mrb[16].mxu1 %vm1047_vm2, %v2561_v33  ;;  %s3852_s26 = scalar_lea.vmem %s3851_s4, 1024 }
 0xda1   : > { %p3854_p8 = scmp.lt.s32.totalorder %s3852_s26, %s3846_s14 }
 0xda3   : > { %p3855_p4 = por %p3854_p8, %p3853_p9 }
 0xda5   : > { %p3856_p10 = pnand %p3855_p4, %p3849_p12 }
 0xe73   : > { %v2636_v27 = vpop.f32.mrb[16].mxu1 }
 0xe74   : > { %2649 = vrot.lane.b32.xlu0 %v2636_v27, %s3999_s21  ;;  %v3235_v6 = vpop.f32.mrb[17].mxu1 }
 0xee6   : > { %v2650_v52 = vpop.permute.xlu0 %2649 }
 0xee7   : > { %v2656_v53 = vsel %vm2655_vm4, %v2654_v50, %v2650_v52 }
 0xee8   : > { %3245 = vmatmul.mubr.msk.f32.vlgmr.msra.gmra.mrb[12].mxu0 %vm796_vm1, %v2656_v53 }
 0xee9   : > { %3859 = shalt.err (!%p3856_p10)
}
 0xeea   : > { %s3860_s27 = scalar_lea.hbm %s4811_s2, 512  ;;  %s3864_s22 = scalar_lea.hbm %s5001_s18, 1024 }
 0xeeb   : > { %p3861_p7 = scmp.ne.s32.totalorder %s4811_s2, %s3860_s27  ;;  %p3865_p1 = scmp.lt.u32.totalorder %s4811_s2, %s5001_s18 }
 0xeec   : > { %p3866_p5 = scmp.lt.u32.totalorder %s3864_s22, %s3860_s27  ;;  %p3868_p0 = scmp.lt.u32.totalorder %s3860_s27, %s4811_s2 }
 0xeed   : > { %p3862_p3 = pnand %p3861_p7, %p5002_p6 }
 0xeee   : > { %p3867_p11 = por %p3866_p5, %p3865_p1 }
 0xeef   : > { %p3863_p13 = pneg %p3862_p3 }
 0xef0   : > { %p3869_p2 = por %p3868_p0, %p3867_p11 }
 0xef2   : > { %p3870_p12 = pnand %p3869_p2, %p3863_p13 }
 0xef4   : > { %3873 = shalt.err (!%p3870_p12)
}
 0xef5   : > { %s4001_s1 = smov 128   ;;  %v3089_v3 = vld [vmem:[#allocation20] ss:$0 sm:$0xff]  ;;  %s3093_s29 = sshll.u32 %s4122_s20, 7 }
 0xef6   : > { %3310 = dma.vmem_to_hbm [thread:$0]  (%p5002_p6), %s4813_s25, 512, %s4811_s2, %s2748_s15, %s4001_s1, %s4001_s1, %s3997_s28  }
 0xef7   : > { %s774_s19 = scalar_lea.vmem [#allocation22], %s4458_s9  ;;  %s5003_s26 = sld [smem:[#allocation52_spill]] }
 0xef8   : > { %s2761_s14 = sshll.u32 %s774_s19, 4  ;;  %s2743_s28 = scalar_lea.sflag [#allocation5], %s4455_s24  ;;  %s4847_s14 = int_to_ptr.vmem [resolvable:$true] %s2761_s14 }
 0xef9   : > { %s3874_s25 = scalar_lea.vmem %s4847_s14, 128  ;;  %s4002_s20 = smov [#allocation22]  }
 0xefa   : > { %p3875_p9 = scmp.ne.s32.totalorder %s4847_s14, %s3874_s25  ;;  %s3878_s9 = sshll.u32 %s4002_s20, 4  ;;  %s3879_s9 = int_to_ptr.vmem [resolvable:$false] %s3878_s9 }
 0xefb   : > { %s3880_s2 = scalar_lea.vmem %s3879_s9, 256  ;;  %p3881_p10 = scmp.lt.s32.totalorder %s4847_s14, %s3879_s9 }
 0xefc   : > { %p3876_p8 = pnand %p3875_p9, %p5002_p6  ;;  %p3882_p7 = scmp.lt.s32.totalorder %s3880_s2, %s3874_s25 }
 0xefd   : > { %s4845_s27 = scalar_lea.hbm %s5003_s26, %s3093_s29 }
 0xefe   : > { %p3877_p4 = pneg %p3876_p8  ;;  %p3883_p3 = por %p3882_p7, %p3881_p10 }
 0xf00   : > { %p3884_p13 = pnand %p3883_p3, %p3877_p4 }
 0xfbb   : > { %v2737_v61 = vpop.f32.mrb[12].mxu0 }
 0xfbc   : > { %v2738_v16 = vadd.f32 %v3089_v3, %v2737_v61  ;;  %v3246_v54 = vpop.f32.mrb[13].mxu0 }
 0xfbe   : > { %2741 = vst.msk [vmem:[%s774_s19] sm:$0xff] %vm796_vm1, %v2738_v16 }
 0xfbf   : > { %3887 = shalt.err (!%p3884_p13)
}
 0xfc0   : > { %s3888_s24 = scalar_lea.hbm %s4845_s27, 128  ;;  %s3892_s17 = scalar_lea.hbm %s5003_s26, 256 }
 0xfc1   : > { %p3889_p1 = scmp.ne.s32.totalorder %s4845_s27, %s3888_s24  ;;  %p3893_p0 = scmp.lt.u32.totalorder %s4845_s27, %s5003_s26 }
 0xfc2   : > { %p3894_p2 = scmp.lt.u32.totalorder %s3892_s17, %s3888_s24  ;;  %p3896_p9 = scmp.lt.u32.totalorder %s3888_s24, %s4845_s27 }
 0xfc3   : > { %p3890_p5 = pnand %p3889_p1, %p5002_p6 }
 0xfc4   : > { %p3895_p12 = por %p3894_p2, %p3893_p0 }
 0xfc5   : > { %p3891_p11 = pneg %p3890_p5 }
 0xfc6   : > { %p3897_p8 = por %p3896_p9, %p3895_p12 }
 0xfc8   : > { %p3898_p4 = pnand %p3897_p8, %p3891_p11 }
 0xfca   : > { %3901 = shalt.err (!%p3898_p4)
}
 0xfcb   : > { %3309 = dma.vmem_to_hbm [thread:$0]  (%p5002_p6), %s4847_s14, 128, %s4845_s27, %s2743_s28  }
 0xfcc PF: > { %s5004_s21 = sld [smem:[#allocation34_spill]]  ;;  %s5005_s1 = sld [smem:[#allocation39_spill]] }
 0xfcd   : > { %s5006_s29 = sld [smem:[#allocation35_spill]] }
 0xfd2   : > { %s2789_s19 = sand.u32 1, %s5004_s21   ;;  %p5007_p10 = scmp.ne.s32.totalorder %s5005_s1, 0 }
 0xfd3   : > { %p5008_p7 = scmp.ge.s32.totalorder %s5006_s29, 2  ;;  %s2790_s3 = scalar_lea.sflag [#allocation5], %s2789_s19 }
 0xfd5   : > { %p3349_p3 = pnand %p5008_p7, %p5007_p10 }
 0xfd7   : > { %3947 = dma.done.wait (!%p3349_p3), %s2790_s3, 128  }
 0xfd8   : > { %3949 = vsyncadd (!%p3349_p3), %s2790_s3, 4294967168  ;;  %s2799_s4 = scalar_lea.sflag [#allocation24], %s2789_s19 }
 0xfd9   : > { %3951 = dma.done.wait (!%p3349_p3), %s2799_s4, 512  }
 0xfda   : > { %3953 = vsyncadd (!%p3349_p3), %s2799_s4, 4294966784  ;;  %s5009_s14 = sld [smem:[#allocation36_spill]]  ;;  %s5010_s11 = sld [smem:[#allocation37_spill]] }
 0xfdb   : > { %s5011_s29 = smov %s3960_s30  ;;  %s5012_s30 = smov %s3964_s0 }
 0xfe0   : > { %p44_p6 = scmp.ge.s32.totalorder %s5009_s14, 4   ;;  %s5013_s0 = smov %s5010_s11 }
 0xfe2   :  { %46 = sbr.rel (!%p44_p6) target bundleno = 30 (0x1e), region = 210 }
 0xfe9   :  { %2804 = vsyncpa [#allocation4], 1 }
 0xfea   :  { %2806 = vsyncpa [#allocation4 + $0x1], 1 }
 0xfeb   :  { %2807 = vsyncpa [#allocation8], 1 }
 0xfec   :  { %2809 = vsyncpa [#allocation8 + $0x1], 1 }
 0xfed   :  { %2810 = vsyncpa [#allocation11], 1 }
 0xfee   :  { %2811 = vsyncpa [#allocation14], 1 }
 0xfef   :  { %2812 = vsyncpa [#allocation17], 1 }
 0xff0   :  { %2813 = vsyncpa [#allocation21], 1 }
 0xff1   :  { %2814 = vsyncpa [#allocation5], 1 }
 0xff2   :  { %2816 = vsyncpa [#allocation5 + $0x1], 1 }
 0xff3   :  { %2817 = vsyncpa [#allocation24], 1 }
 0xff4   :  { %2819 = vsyncpa [#allocation24 + $0x1], 1 }
 0xff5   :  { %2820 = vsyncpa [#allocation6], 1 }
 0xff6   :  { %2822 = vsyncpa [#allocation6 + $0x1], 1 }

</bundles_post_ra>
